<compile_context>
chip_gen: v7x
topology: tpu7x:2x2x1
jax: 0.10.0
libtpu: 0.0.40
codegen_flags: <defaults>
</compile_context>

<pallas_src>
import functools

import jax
import jax.numpy as jnp
import numpy as np
from jax import lax
from jax.experimental import pallas as pl
from jax.experimental.pallas import tpu as pltpu

EPS = 1e-5  # PyTorch BatchNorm2d default eps

# tap index t = kh*3 + kw  <->  spatial offset (dh, dw) = (kh-1, kw-1)
_OFFSETS_3X3 = [(kh - 1, kw - 1) for kh in range(3) for kw in range(3)]


def _flat_block_kernel(x_ref, w_ref, b_ref, g_ref, be_ref, m_ref,
                       out_ref, patches_ref, *, num_layers, width):
    """conv1[l] -> bn1[l] -> relu (x num_layers), then relu(x + x_input).

    Data layout: (C, N*H*W) with N*H*W on lanes.  patches_ref is a (9C, N*H*W)
    VMEM scratch; each tap is written as a full-lane-width row block, so all
    stores are lane-dense (only cheap sublane masking remains).
    """
    C, NHW = x_ref.shape
    inv_n = 1.0 / NHW

    x = x_ref[...]
    x_input = x

    # NOTE: num_layers is small here; for large L move this to a grid axis /
    # lax.fori_loop with pl.ds-indexed weights to bound code size.
    for l in range(num_layers):
        # shifted_t[c, i] = x[c, i + dh*W + dw], zero outside the image.
        # pltpu.roll is an XLU lane rotation; wrap-around lanes are exactly the
        # ones zeroed by the precomputed boundary mask.
        for t, (dh, dw) in enumerate(_OFFSETS_3X3):
            delta = dh * width + dw
            rolled = x if delta == 0 else pltpu.roll(x, (-delta) % NHW, 1)
            patches_ref[t * C:(t + 1) * C, :] = rolled * m_ref[t:t + 1, :]

        # ONE MXU matmul per layer (im2col): (C, 9C) @ (9C, NHW), default precision.
        y = jnp.dot(w_ref[l], patches_ref[...],
                    preferred_element_type=jnp.float32) + b_ref[l]

        # BatchNorm2d training mode (biased variance), single pass over lanes.
        s = jnp.sum(y, axis=1, keepdims=True)
        ss = jnp.sum(y * y, axis=1, keepdims=True)
        mean = s * inv_n
        var = ss * inv_n - mean * mean
        y = (y - mean) * (lax.rsqrt(var + EPS) * g_ref[l]) + be_ref[l]
        x = jnp.maximum(y, 0.0)

    out_ref[...] = jnp.maximum(x + x_input, 0.0)       # skip connection


def _out_conv_kernel(p_ref, w_ref, b_ref, g_ref, be_ref, o_ref):
    """conv_output as (Cout,16C)@(16C,N*Ho*Wo) -> bn2 -> relu (lane-dense out)."""
    M = p_ref.shape[1]
    inv_n = 1.0 / M
    y = jnp.dot(w_ref[...], p_ref[...],
                preferred_element_type=jnp.float32) + b_ref[...]
    s = jnp.sum(y, axis=1, keepdims=True)
    ss = jnp.sum(y * y, axis=1, keepdims=True)
    mean = s * inv_n
    var = ss * inv_n - mean * mean
    y = (y - mean) * (lax.rsqrt(var + EPS) * g_ref[...]) + be_ref[...]
    o_ref[...] = jnp.maximum(y, 0.0)


def cnn_block_skip_connection(x_nchw, params):
    """Pallas implementation of CNNBlockSkipConnection.forward (NCHW in / NCHW out)."""
    w1, b1, g1, be1, w2, b2, g2, be2 = params
    L = w1.shape[0]
    N, Cin, H, W = x_nchw.shape
    Cout = w2.shape[0]
    Ho, Wo = H // 2, W // 2
    NHW = N * H * W

    # channel-major / spatial-flattened layout: (Cin, N*H*W), lanes = N*H*W.
    x2d = jnp.transpose(x_nchw, (1, 0, 2, 3)).reshape(Cin, NHW).astype(jnp.float32)

    # conv1 weights: torch (L, O, I, 3, 3) -> (L, O, 9*I); column = (kh*3+kw)*I + ci
    w1_mat = jnp.transpose(w1, (0, 1, 3, 4, 2)).reshape(L, Cin, 9 * Cin)

    # zero-padding boundary masks for the 9 taps, precomputed lane-dense (9, NHW)
    ii = jnp.arange(NHW, dtype=jnp.int32)
    hh = (ii // W) % H
    ww = ii % W
    masks = []
    for dh, dw in _OFFSETS_3X3:
        masks.append((hh + dh >= 0) & (hh + dh < H) & (ww + dw >= 0) & (ww + dw < W))
    mask9 = jnp.stack(masks, axis=0).astype(jnp.float32)          # (9, NHW)

    vmem = pl.BlockSpec(memory_space=pltpu.MemorySpace.VMEM)

    y2d = pl.pallas_call(
        functools.partial(_flat_block_kernel, num_layers=L, width=W),
        out_shape=jax.ShapeDtypeStruct((Cin, NHW), jnp.float32),
        in_specs=[vmem] * 6,
        out_specs=vmem,
        scratch_shapes=[pltpu.VMEM((9 * Cin, NHW), jnp.float32)],
    )(x2d, w1_mat,
      b1.reshape(L, Cin, 1), g1.reshape(L, Cin, 1), be1.reshape(L, Cin, 1),
      mask9)

    # ---- plain-JAX glue: im2col for the 4x4 / stride-2 / pad-1 conv_output ----
    # TODO(synk): fuse this strided patch extraction into the Pallas kernels to
    #             avoid the extra HBM round trip at large H, W.
    y4 = y2d.reshape(Cin, N, H, W)
    yp = jnp.pad(y4, ((0, 0), (0, 0), (1, 1), (1, 1)))
    cols = [yp[:, :, kh:kh + 2 * Ho:2, kw:kw + 2 * Wo:2]
            for kh in range(4) for kw in range(4)]                 # each (Cin,N,Ho,Wo)
    patches = jnp.stack(cols, axis=0).reshape(16 * Cin, N * Ho * Wo)

    # conv_output weights: torch (O, I, 4, 4) -> (O, 16*I); column = (kh*4+kw)*I + ci
    w2_mat = jnp.transpose(w2, (0, 2, 3, 1)).reshape(Cout, 16 * Cin)

    out2d = pl.pallas_call(
        _out_conv_kernel,
        out_shape=jax.ShapeDtypeStruct((Cout, N * Ho * Wo), jnp.float32),
        in_specs=[vmem] * 5,
        out_specs=vmem,
    )(patches, w2_mat,
      b2.reshape(Cout, 1), g2.reshape(Cout, 1), be2.reshape(Cout, 1))

    out = out2d.reshape(Cout, N, Ho, Wo)
    return jnp.transpose(out, (1, 0, 2, 3))                        # -> NCHW


def reference_forward(x_nchw, params):
    """Pure-JAX reference matching the PyTorch module (training-mode BN)."""
    w1, b1, g1, be1, w2, b2, g2, be2 = params
    L = w1.shape[0]
    dn = ('NCHW', 'OIHW', 'NCHW')

    def bn(y, gamma, beta):
        mean = jnp.mean(y, axis=(0, 2, 3), keepdims=True)
        var = jnp.mean((y - mean) ** 2, axis=(0, 2, 3), keepdims=True)
        return ((y - mean) * lax.rsqrt(var + EPS)
                * gamma[None, :, None, None] + beta[None, :, None, None])

    x = x_nchw.astype(jnp.float32)
    x_in = x
    for l in range(L):
        x = lax.conv_general_dilated(x, w1[l], (1, 1), [(1, 1), (1, 1)],
                                     dimension_numbers=dn,
                                     precision=lax.Precision.HIGHEST)
        x = x + b1[l][None, :, None, None]
        x = jnp.maximum(bn(x, g1[l], be1[l]), 0.0)
    x = jnp.maximum(x + x_in, 0.0)
    x = lax.conv_general_dilated(x, w2, (2, 2), [(1, 1), (1, 1)],
                                 dimension_numbers=dn,
                                 precision=lax.Precision.HIGHEST)
    x = x + b2[None, :, None, None]
    return jnp.maximum(bn(x, g2, be2), 0.0)


if __name__ == "__main__":
    # Small shapes consistent with the module: in_channel=4, out_channel=8,
    # num_of_flat_conv=2, batch=2, spatial=16x16.
    N, Cin, Cout, H, W, L = 2, 4, 8, 16, 16, 2

    key = jax.random.PRNGKey(0)
    ks = jax.random.split(key, 9)
    w1 = 0.2 * jax.random.normal(ks[0], (L, Cin, Cin, 3, 3), jnp.float32)
    b1 = 0.1 * jax.random.normal(ks[1], (L, Cin), jnp.float32)
    g1 = 1.0 + 0.1 * jax.random.normal(ks[2], (L, Cin), jnp.float32)
    be1 = 0.1 * jax.random.normal(ks[3], (L, Cin), jnp.float32)
    w2 = 0.2 * jax.random.normal(ks[4], (Cout, Cin, 4, 4), jnp.float32)
    b2 = 0.1 * jax.random.normal(ks[5], (Cout,), jnp.float32)
    g2 = 1.0 + 0.1 * jax.random.normal(ks[6], (Cout,), jnp.float32)
    be2 = 0.1 * jax.random.normal(ks[7], (Cout,), jnp.float32)
    params = (w1, b1, g1, be1, w2, b2, g2, be2)

    x = jax.random.normal(ks[8], (N, Cin, H, W), jnp.float32)      # NCHW input

    out = jax.block_until_ready(cnn_block_skip_connection(x, params))
    ref = jax.block_until_ready(reference_forward(x, params))

    assert out.shape == (N, Cout, H // 2, W // 2)
    # Kernel matmuls use DEFAULT MXU precision (single-pass bf16 operands, f32
    # accumulate) per the perf review; the reference runs at HIGHEST, so the
    # comparison uses a bf16-level tolerance (estimated worst-case ~1e-2).
    np.testing.assert_allclose(np.asarray(out), np.asarray(ref), rtol=3e-2, atol=3e-2)
    print("KERNEL_OK")
</pallas_src>

<mosaic_0001>
module attributes {stable_mosaic.version = 11 : i64} {
  func.func @_flat_block_kernel(%arg0: memref<4x512xf32, #tpu.memory_space<vmem>>, %arg1: memref<2x4x36xf32, #tpu.memory_space<vmem>>, %arg2: memref<2x4x1xf32, #tpu.memory_space<vmem>>, %arg3: memref<2x4x1xf32, #tpu.memory_space<vmem>>, %arg4: memref<2x4x1xf32, #tpu.memory_space<vmem>>, %arg5: memref<9x512xf32, #tpu.memory_space<vmem>>, %arg6: memref<4x512xf32, #tpu.memory_space<vmem>>, %arg7: memref<36x512xf32, #tpu.memory_space<vmem>>) attributes {dimension_semantics = [], scalar_prefetch = 0 : i64, scratch_operands = 1 : i64, tpu.core_type = #tpu.core_type<tc>} {
    %c0 = arith.constant 0 : index
    %c0_0 = arith.constant 0 : index
    %0 = vector.load %arg0[%c0, %c0_0] : memref<4x512xf32, #tpu.memory_space<vmem>>, vector<4x512xf32>
    %c17_i32 = arith.constant 17 : i32
    %1 = tpu.dynamic_rotate %0 by %c17_i32 dim 1 : vector<4x512xf32>, i32 -> vector<4x512xf32>
    %c0_1 = arith.constant 0 : index
    %c0_2 = arith.constant 0 : index
    %2 = vector.load %arg5[%c0_1, %c0_2] : memref<9x512xf32, #tpu.memory_space<vmem>>, vector<1x512xf32>
    %3 = vector.broadcast %2 : vector<1x512xf32> to vector<4x512xf32>
    %4 = arith.mulf %1, %3 : vector<4x512xf32>
    %c0_3 = arith.constant 0 : index
    %c0_4 = arith.constant 0 : index
    %5 = vector.load %arg7[%c0_3, %c0_4] : memref<36x512xf32, #tpu.memory_space<vmem>>, vector<4x512xf32>
    tpu.vector_store %arg7[%c0_3, %c0_4], %4 {strides = array<i32>} : memref<36x512xf32, #tpu.memory_space<vmem>>, vector<4x512xf32>,
    %c16_i32 = arith.constant 16 : i32
    %6 = tpu.dynamic_rotate %0 by %c16_i32 dim 1 : vector<4x512xf32>, i32 -> vector<4x512xf32>
    %c1 = arith.constant 1 : index
    %c0_5 = arith.constant 0 : index
    %7 = vector.load %arg5[%c1, %c0_5] : memref<9x512xf32, #tpu.memory_space<vmem>>, vector<1x512xf32>
    %8 = vector.broadcast %7 : vector<1x512xf32> to vector<4x512xf32>
    %9 = arith.mulf %6, %8 : vector<4x512xf32>
    %c4 = arith.constant 4 : index
    %c0_6 = arith.constant 0 : index
    %10 = vector.load %arg7[%c4, %c0_6] : memref<36x512xf32, #tpu.memory_space<vmem>>, vector<4x512xf32>
    tpu.vector_store %arg7[%c4, %c0_6], %9 {strides = array<i32>} : memref<36x512xf32, #tpu.memory_space<vmem>>, vector<4x512xf32>,
    %c15_i32 = arith.constant 15 : i32
    %11 = tpu.dynamic_rotate %0 by %c15_i32 dim 1 : vector<4x512xf32>, i32 -> vector<4x512xf32>
    %c2 = arith.constant 2 : index
    %c0_7 = arith.constant 0 : index
    %12 = vector.load %arg5[%c2, %c0_7] : memref<9x512xf32, #tpu.memory_space<vmem>>, vector<1x512xf32>
    %13 = vector.broadcast %12 : vector<1x512xf32> to vector<4x512xf32>
    %14 = arith.mulf %11, %13 : vector<4x512xf32>
    %c8 = arith.constant 8 : index
    %c0_8 = arith.constant 0 : index
    %15 = vector.load %arg7[%c8, %c0_8] : memref<36x512xf32, #tpu.memory_space<vmem>>, vector<4x512xf32>
    tpu.vector_store %arg7[%c8, %c0_8], %14 {strides = array<i32>} : memref<36x512xf32, #tpu.memory_space<vmem>>, vector<4x512xf32>,
    %c1_i32 = arith.constant 1 : i32
    %16 = tpu.dynamic_rotate %0 by %c1_i32 dim 1 : vector<4x512xf32>, i32 -> vector<4x512xf32>
    %c3 = arith.constant 3 : index
    %c0_9 = arith.constant 0 : index
    %17 = vector.load %arg5[%c3, %c0_9] : memref<9x512xf32, #tpu.memory_space<vmem>>, vector<1x512xf32>
    %18 = vector.broadcast %17 : vector<1x512xf32> to vector<4x512xf32>
    %19 = arith.mulf %16, %18 : vector<4x512xf32>
    %c12 = arith.constant 12 : index
    %c0_10 = arith.constant 0 : index
    %20 = vector.load %arg7[%c12, %c0_10] : memref<36x512xf32, #tpu.memory_space<vmem>>, vector<4x512xf32>
    tpu.vector_store %arg7[%c12, %c0_10], %19 {strides = array<i32>} : memref<36x512xf32, #tpu.memory_space<vmem>>, vector<4x512xf32>,
    %c4_11 = arith.constant 4 : index
    %c0_12 = arith.constant 0 : index
    %21 = vector.load %arg5[%c4_11, %c0_12] : memref<9x512xf32, #tpu.memory_space<vmem>>, vector<1x512xf32>
    %22 = vector.broadcast %21 : vector<1x512xf32> to vector<4x512xf32>
    %23 = arith.mulf %0, %22 : vector<4x512xf32>
    %c16 = arith.constant 16 : index
    %c0_13 = arith.constant 0 : index
    %24 = vector.load %arg7[%c16, %c0_13] : memref<36x512xf32, #tpu.memory_space<vmem>>, vector<4x512xf32>
    tpu.vector_store %arg7[%c16, %c0_13], %23 {strides = array<i32>} : memref<36x512xf32, #tpu.memory_space<vmem>>, vector<4x512xf32>,
    %c511_i32 = arith.constant 511 : i32
    %25 = tpu.dynamic_rotate %0 by %c511_i32 dim 1 : vector<4x512xf32>, i32 -> vector<4x512xf32>
    %c5 = arith.constant 5 : index
    %c0_14 = arith.constant 0 : index
    %26 = vector.load %arg5[%c5, %c0_14] : memref<9x512xf32, #tpu.memory_space<vmem>>, vector<1x512xf32>
    %27 = vector.broadcast %26 : vector<1x512xf32> to vector<4x512xf32>
    %28 = arith.mulf %25, %27 : vector<4x512xf32>
    %c20 = arith.constant 20 : index
    %c0_15 = arith.constant 0 : index
    %29 = vector.load %arg7[%c20, %c0_15] : memref<36x512xf32, #tpu.memory_space<vmem>>, vector<4x512xf32>
    tpu.vector_store %arg7[%c20, %c0_15], %28 {strides = array<i32>} : memref<36x512xf32, #tpu.memory_space<vmem>>, vector<4x512xf32>,
    %c497_i32 = arith.constant 497 : i32
    %30 = tpu.dynamic_rotate %0 by %c497_i32 dim 1 : vector<4x512xf32>, i32 -> vector<4x512xf32>
    %c6 = arith.constant 6 : index
    %c0_16 = arith.constant 0 : index
    %31 = vector.load %arg5[%c6, %c0_16] : memref<9x512xf32, #tpu.memory_space<vmem>>, vector<1x512xf32>
    %32 = vector.broadcast %31 : vector<1x512xf32> to vector<4x512xf32>
    %33 = arith.mulf %30, %32 : vector<4x512xf32>
    %c24 = arith.constant 24 : index
    %c0_17 = arith.constant 0 : index
    %34 = vector.load %arg7[%c24, %c0_17] : memref<36x512xf32, #tpu.memory_space<vmem>>, vector<4x512xf32>
    tpu.vector_store %arg7[%c24, %c0_17], %33 {strides = array<i32>} : memref<36x512xf32, #tpu.memory_space<vmem>>, vector<4x512xf32>,
    %c496_i32 = arith.constant 496 : i32
    %35 = tpu.dynamic_rotate %0 by %c496_i32 dim 1 : vector<4x512xf32>, i32 -> vector<4x512xf32>
    %c7 = arith.constant 7 : index
    %c0_18 = arith.constant 0 : index
    %36 = vector.load %arg5[%c7, %c0_18] : memref<9x512xf32, #tpu.memory_space<vmem>>, vector<1x512xf32>
    %37 = vector.broadcast %36 : vector<1x512xf32> to vector<4x512xf32>
    %38 = arith.mulf %35, %37 : vector<4x512xf32>
    %c28 = arith.constant 28 : index
    %c0_19 = arith.constant 0 : index
    %39 = vector.load %arg7[%c28, %c0_19] : memref<36x512xf32, #tpu.memory_space<vmem>>, vector<4x512xf32>
    tpu.vector_store %arg7[%c28, %c0_19], %38 {strides = array<i32>} : memref<36x512xf32, #tpu.memory_space<vmem>>, vector<4x512xf32>,
    %c495_i32 = arith.constant 495 : i32
    %40 = tpu.dynamic_rotate %0 by %c495_i32 dim 1 : vector<4x512xf32>, i32 -> vector<4x512xf32>
    %c8_20 = arith.constant 8 : index
    %c0_21 = arith.constant 0 : index
    %41 = vector.load %arg5[%c8_20, %c0_21] : memref<9x512xf32, #tpu.memory_space<vmem>>, vector<1x512xf32>
    %42 = vector.broadcast %41 : vector<1x512xf32> to vector<4x512xf32>
    %43 = arith.mulf %40, %42 : vector<4x512xf32>
    %c32 = arith.constant 32 : index
    %c0_22 = arith.constant 0 : index
    %44 = vector.load %arg7[%c32, %c0_22] : memref<36x512xf32, #tpu.memory_space<vmem>>, vector<4x512xf32>
    tpu.vector_store %arg7[%c32, %c0_22], %43 {strides = array<i32>} : memref<36x512xf32, #tpu.memory_space<vmem>>, vector<4x512xf32>,
    %c0_23 = arith.constant 0 : index
    %c0_24 = arith.constant 0 : index
    %c0_25 = arith.constant 0 : index
    %45 = vector.load %arg1[%c0_23, %c0_24, %c0_25] : memref<2x4x36xf32, #tpu.memory_space<vmem>>, vector<1x4x36xf32>
    %46 = vector.shape_cast %45 : vector<1x4x36xf32> to vector<4x36xf32>
    %c0_26 = arith.constant 0 : index
    %c0_27 = arith.constant 0 : index
    %47 = vector.load %arg7[%c0_26, %c0_27] : memref<36x512xf32, #tpu.memory_space<vmem>>, vector<36x512xf32>
    %cst = arith.constant dense<0.000000e+00> : vector<4x512xf32>
    %48 = tpu.matmul %46, %47, %cst {dimension_numbers = #tpu.dot_dimension_numbers<[1], [0], [0], [1], [0, 0, 1, 1], [], []>} : vector<4x36xf32>, vector<36x512xf32>, vector<4x512xf32> -> vector<4x512xf32>
    %c0_28 = arith.constant 0 : index
    %c0_29 = arith.constant 0 : index
    %c0_30 = arith.constant 0 : index
    %49 = vector.load %arg2[%c0_28, %c0_29, %c0_30] : memref<2x4x1xf32, #tpu.memory_space<vmem>>, vector<1x4x1xf32>
    %50 = vector.shape_cast %49 : vector<1x4x1xf32> to vector<4x1xf32>
    %51 = vector.broadcast %50 : vector<4x1xf32> to vector<4x512xf32>
    %52 = arith.addf %48, %51 : vector<4x512xf32>
    %cst_31 = arith.constant dense<0.000000e+00> : vector<4xf32>
    %53 = vector.multi_reduction <add>, %52, %cst_31 [1] : vector<4x512xf32> to vector<4xf32>
    %54 = vector.shape_cast %53 : vector<4xf32> to vector<4x1xf32>
    %55 = arith.mulf %52, %52 : vector<4x512xf32>
    %cst_32 = arith.constant dense<0.000000e+00> : vector<4xf32>
    %56 = vector.multi_reduction <add>, %55, %cst_32 [1] : vector<4x512xf32> to vector<4xf32>
    %57 = vector.shape_cast %56 : vector<4xf32> to vector<4x1xf32>
    %cst_33 = arith.constant 0.001953125 : f32
    %58 = vector.broadcast %cst_33 : f32 to vector<4x1xf32>
    %59 = arith.mulf %54, %58 : vector<4x1xf32>
    %cst_34 = arith.constant 0.001953125 : f32
    %60 = vector.broadcast %cst_34 : f32 to vector<4x1xf32>
    %61 = arith.mulf %57, %60 : vector<4x1xf32>
    %62 = arith.mulf %59, %59 : vector<4x1xf32>
    %63 = arith.subf %61, %62 : vector<4x1xf32>
    %64 = vector.broadcast %59 : vector<4x1xf32> to vector<4x512xf32>
    %65 = arith.subf %52, %64 : vector<4x512xf32>
    %cst_35 = arith.constant 9.99999974E-6 : f32
    %66 = vector.broadcast %cst_35 : f32 to vector<4x1xf32>
    %67 = arith.addf %63, %66 : vector<4x1xf32>
    %68 = math.rsqrt %67 : vector<4x1xf32>
    %c0_36 = arith.constant 0 : index
    %c0_37 = arith.constant 0 : index
    %c0_38 = arith.constant 0 : index
    %69 = vector.load %arg3[%c0_36, %c0_37, %c0_38] : memref<2x4x1xf32, #tpu.memory_space<vmem>>, vector<1x4x1xf32>
    %70 = vector.shape_cast %69 : vector<1x4x1xf32> to vector<4x1xf32>
    %71 = arith.mulf %68, %70 : vector<4x1xf32>
    %72 = vector.broadcast %71 : vector<4x1xf32> to vector<4x512xf32>
    %73 = arith.mulf %65, %72 : vector<4x512xf32>
    %c0_39 = arith.constant 0 : index
    %c0_40 = arith.constant 0 : index
    %c0_41 = arith.constant 0 : index
    %74 = vector.load %arg4[%c0_39, %c0_40, %c0_41] : memref<2x4x1xf32, #tpu.memory_space<vmem>>, vector<1x4x1xf32>
    %75 = vector.shape_cast %74 : vector<1x4x1xf32> to vector<4x1xf32>
    %76 = vector.broadcast %75 : vector<4x1xf32> to vector<4x512xf32>
    %77 = arith.addf %73, %76 : vector<4x512xf32>
    %cst_42 = arith.constant 0.000000e+00 : f32
    %78 = vector.broadcast %cst_42 : f32 to vector<4x512xf32>
    %79 = arith.maximumf %77, %78 : vector<4x512xf32>
    %c17_i32_43 = arith.constant 17 : i32
    %80 = tpu.dynamic_rotate %79 by %c17_i32_43 dim 1 : vector<4x512xf32>, i32 -> vector<4x512xf32>
    %c0_44 = arith.constant 0 : index
    %c0_45 = arith.constant 0 : index
    %81 = vector.load %arg5[%c0_44, %c0_45] : memref<9x512xf32, #tpu.memory_space<vmem>>, vector<1x512xf32>
    %82 = vector.broadcast %81 : vector<1x512xf32> to vector<4x512xf32>
    %83 = arith.mulf %80, %82 : vector<4x512xf32>
    %c0_46 = arith.constant 0 : index
    %c0_47 = arith.constant 0 : index
    %84 = vector.load %arg7[%c0_46, %c0_47] : memref<36x512xf32, #tpu.memory_space<vmem>>, vector<4x512xf32>
    tpu.vector_store %arg7[%c0_46, %c0_47], %83 {strides = array<i32>} : memref<36x512xf32, #tpu.memory_space<vmem>>, vector<4x512xf32>,
    %c16_i32_48 = arith.constant 16 : i32
    %85 = tpu.dynamic_rotate %79 by %c16_i32_48 dim 1 : vector<4x512xf32>, i32 -> vector<4x512xf32>
    %c1_49 = arith.constant 1 : index
    %c0_50 = arith.constant 0 : index
    %86 = vector.load %arg5[%c1_49, %c0_50] : memref<9x512xf32, #tpu.memory_space<vmem>>, vector<1x512xf32>
    %87 = vector.broadcast %86 : vector<1x512xf32> to vector<4x512xf32>
    %88 = arith.mulf %85, %87 : vector<4x512xf32>
    %c4_51 = arith.constant 4 : index
    %c0_52 = arith.constant 0 : index
    %89 = vector.load %arg7[%c4_51, %c0_52] : memref<36x512xf32, #tpu.memory_space<vmem>>, vector<4x512xf32>
    tpu.vector_store %arg7[%c4_51, %c0_52], %88 {strides = array<i32>} : memref<36x512xf32, #tpu.memory_space<vmem>>, vector<4x512xf32>,
    %c15_i32_53 = arith.constant 15 : i32
    %90 = tpu.dynamic_rotate %79 by %c15_i32_53 dim 1 : vector<4x512xf32>, i32 -> vector<4x512xf32>
    %c2_54 = arith.constant 2 : index
    %c0_55 = arith.constant 0 : index
    %91 = vector.load %arg5[%c2_54, %c0_55] : memref<9x512xf32, #tpu.memory_space<vmem>>, vector<1x512xf32>
    %92 = vector.broadcast %91 : vector<1x512xf32> to vector<4x512xf32>
    %93 = arith.mulf %90, %92 : vector<4x512xf32>
    %c8_56 = arith.constant 8 : index
    %c0_57 = arith.constant 0 : index
    %94 = vector.load %arg7[%c8_56, %c0_57] : memref<36x512xf32, #tpu.memory_space<vmem>>, vector<4x512xf32>
    tpu.vector_store %arg7[%c8_56, %c0_57], %93 {strides = array<i32>} : memref<36x512xf32, #tpu.memory_space<vmem>>, vector<4x512xf32>,
    %c1_i32_58 = arith.constant 1 : i32
    %95 = tpu.dynamic_rotate %79 by %c1_i32_58 dim 1 : vector<4x512xf32>, i32 -> vector<4x512xf32>
    %c3_59 = arith.constant 3 : index
    %c0_60 = arith.constant 0 : index
    %96 = vector.load %arg5[%c3_59, %c0_60] : memref<9x512xf32, #tpu.memory_space<vmem>>, vector<1x512xf32>
    %97 = vector.broadcast %96 : vector<1x512xf32> to vector<4x512xf32>
    %98 = arith.mulf %95, %97 : vector<4x512xf32>
    %c12_61 = arith.constant 12 : index
    %c0_62 = arith.constant 0 : index
    %99 = vector.load %arg7[%c12_61, %c0_62] : memref<36x512xf32, #tpu.memory_space<vmem>>, vector<4x512xf32>
    tpu.vector_store %arg7[%c12_61, %c0_62], %98 {strides = array<i32>} : memref<36x512xf32, #tpu.memory_space<vmem>>, vector<4x512xf32>,
    %c4_63 = arith.constant 4 : index
    %c0_64 = arith.constant 0 : index
    %100 = vector.load %arg5[%c4_63, %c0_64] : memref<9x512xf32, #tpu.memory_space<vmem>>, vector<1x512xf32>
    %101 = vector.broadcast %100 : vector<1x512xf32> to vector<4x512xf32>
    %102 = arith.mulf %79, %101 : vector<4x512xf32>
    %c16_65 = arith.constant 16 : index
    %c0_66 = arith.constant 0 : index
    %103 = vector.load %arg7[%c16_65, %c0_66] : memref<36x512xf32, #tpu.memory_space<vmem>>, vector<4x512xf32>
    tpu.vector_store %arg7[%c16_65, %c0_66], %102 {strides = array<i32>} : memref<36x512xf32, #tpu.memory_space<vmem>>, vector<4x512xf32>,
    %c511_i32_67 = arith.constant 511 : i32
    %104 = tpu.dynamic_rotate %79 by %c511_i32_67 dim 1 : vector<4x512xf32>, i32 -> vector<4x512xf32>
    %c5_68 = arith.constant 5 : index
    %c0_69 = arith.constant 0 : index
    %105 = vector.load %arg5[%c5_68, %c0_69] : memref<9x512xf32, #tpu.memory_space<vmem>>, vector<1x512xf32>
    %106 = vector.broadcast %105 : vector<1x512xf32> to vector<4x512xf32>
    %107 = arith.mulf %104, %106 : vector<4x512xf32>
    %c20_70 = arith.constant 20 : index
    %c0_71 = arith.constant 0 : index
    %108 = vector.load %arg7[%c20_70, %c0_71] : memref<36x512xf32, #tpu.memory_space<vmem>>, vector<4x512xf32>
    tpu.vector_store %arg7[%c20_70, %c0_71], %107 {strides = array<i32>} : memref<36x512xf32, #tpu.memory_space<vmem>>, vector<4x512xf32>,
    %c497_i32_72 = arith.constant 497 : i32
    %109 = tpu.dynamic_rotate %79 by %c497_i32_72 dim 1 : vector<4x512xf32>, i32 -> vector<4x512xf32>
    %c6_73 = arith.constant 6 : index
    %c0_74 = arith.constant 0 : index
    %110 = vector.load %arg5[%c6_73, %c0_74] : memref<9x512xf32, #tpu.memory_space<vmem>>, vector<1x512xf32>
    %111 = vector.broadcast %110 : vector<1x512xf32> to vector<4x512xf32>
    %112 = arith.mulf %109, %111 : vector<4x512xf32>
    %c24_75 = arith.constant 24 : index
    %c0_76 = arith.constant 0 : index
    %113 = vector.load %arg7[%c24_75, %c0_76] : memref<36x512xf32, #tpu.memory_space<vmem>>, vector<4x512xf32>
    tpu.vector_store %arg7[%c24_75, %c0_76], %112 {strides = array<i32>} : memref<36x512xf32, #tpu.memory_space<vmem>>, vector<4x512xf32>,
    %c496_i32_77 = arith.constant 496 : i32
    %114 = tpu.dynamic_rotate %79 by %c496_i32_77 dim 1 : vector<4x512xf32>, i32 -> vector<4x512xf32>
    %c7_78 = arith.constant 7 : index
    %c0_79 = arith.constant 0 : index
    %115 = vector.load %arg5[%c7_78, %c0_79] : memref<9x512xf32, #tpu.memory_space<vmem>>, vector<1x512xf32>
    %116 = vector.broadcast %115 : vector<1x512xf32> to vector<4x512xf32>
    %117 = arith.mulf %114, %116 : vector<4x512xf32>
    %c28_80 = arith.constant 28 : index
    %c0_81 = arith.constant 0 : index
    %118 = vector.load %arg7[%c28_80, %c0_81] : memref<36x512xf32, #tpu.memory_space<vmem>>, vector<4x512xf32>
    tpu.vector_store %arg7[%c28_80, %c0_81], %117 {strides = array<i32>} : memref<36x512xf32, #tpu.memory_space<vmem>>, vector<4x512xf32>,
    %c495_i32_82 = arith.constant 495 : i32
    %119 = tpu.dynamic_rotate %79 by %c495_i32_82 dim 1 : vector<4x512xf32>, i32 -> vector<4x512xf32>
    %c8_83 = arith.constant 8 : index
    %c0_84 = arith.constant 0 : index
    %120 = vector.load %arg5[%c8_83, %c0_84] : memref<9x512xf32, #tpu.memory_space<vmem>>, vector<1x512xf32>
    %121 = vector.broadcast %120 : vector<1x512xf32> to vector<4x512xf32>
    %122 = arith.mulf %119, %121 : vector<4x512xf32>
    %c32_85 = arith.constant 32 : index
    %c0_86 = arith.constant 0 : index
    %123 = vector.load %arg7[%c32_85, %c0_86] : memref<36x512xf32, #tpu.memory_space<vmem>>, vector<4x512xf32>
    tpu.vector_store %arg7[%c32_85, %c0_86], %122 {strides = array<i32>} : memref<36x512xf32, #tpu.memory_space<vmem>>, vector<4x512xf32>,
    %c1_87 = arith.constant 1 : index
    %c0_88 = arith.constant 0 : index
    %c0_89 = arith.constant 0 : index
    %124 = vector.load %arg1[%c1_87, %c0_88, %c0_89] : memref<2x4x36xf32, #tpu.memory_space<vmem>>, vector<1x4x36xf32>
    %125 = vector.shape_cast %124 : vector<1x4x36xf32> to vector<4x36xf32>
    %c0_90 = arith.constant 0 : index
    %c0_91 = arith.constant 0 : index
    %126 = vector.load %arg7[%c0_90, %c0_91] : memref<36x512xf32, #tpu.memory_space<vmem>>, vector<36x512xf32>
    %cst_92 = arith.constant dense<0.000000e+00> : vector<4x512xf32>
    %127 = tpu.matmul %125, %126, %cst_92 {dimension_numbers = #tpu.dot_dimension_numbers<[1], [0], [0], [1], [0, 0, 1, 1], [], []>} : vector<4x36xf32>, vector<36x512xf32>, vector<4x512xf32> -> vector<4x512xf32>
    %c1_93 = arith.constant 1 : index
    %c0_94 = arith.constant 0 : index
    %c0_95 = arith.constant 0 : index
    %128 = vector.load %arg2[%c1_93, %c0_94, %c0_95] : memref<2x4x1xf32, #tpu.memory_space<vmem>>, vector<1x4x1xf32>
    %129 = vector.shape_cast %128 : vector<1x4x1xf32> to vector<4x1xf32>
    %130 = vector.broadcast %129 : vector<4x1xf32> to vector<4x512xf32>
    %131 = arith.addf %127, %130 : vector<4x512xf32>
    %cst_96 = arith.constant dense<0.000000e+00> : vector<4xf32>
    %132 = vector.multi_reduction <add>, %131, %cst_96 [1] : vector<4x512xf32> to vector<4xf32>
    %133 = vector.shape_cast %132 : vector<4xf32> to vector<4x1xf32>
    %134 = arith.mulf %131, %131 : vector<4x512xf32>
    %cst_97 = arith.constant dense<0.000000e+00> : vector<4xf32>
    %135 = vector.multi_reduction <add>, %134, %cst_97 [1] : vector<4x512xf32> to vector<4xf32>
    %136 = vector.shape_cast %135 : vector<4xf32> to vector<4x1xf32>
    %cst_98 = arith.constant 0.001953125 : f32
    %137 = vector.broadcast %cst_98 : f32 to vector<4x1xf32>
    %138 = arith.mulf %133, %137 : vector<4x1xf32>
    %cst_99 = arith.constant 0.001953125 : f32
    %139 = vector.broadcast %cst_99 : f32 to vector<4x1xf32>
    %140 = arith.mulf %136, %139 : vector<4x1xf32>
    %141 = arith.mulf %138, %138 : vector<4x1xf32>
    %142 = arith.subf %140, %141 : vector<4x1xf32>
    %143 = vector.broadcast %138 : vector<4x1xf32> to vector<4x512xf32>
    %144 = arith.subf %131, %143 : vector<4x512xf32>
    %cst_100 = arith.constant 9.99999974E-6 : f32
    %145 = vector.broadcast %cst_100 : f32 to vector<4x1xf32>
    %146 = arith.addf %142, %145 : vector<4x1xf32>
    %147 = math.rsqrt %146 : vector<4x1xf32>
    %c1_101 = arith.constant 1 : index
    %c0_102 = arith.constant 0 : index
    %c0_103 = arith.constant 0 : index
    %148 = vector.load %arg3[%c1_101, %c0_102, %c0_103] : memref<2x4x1xf32, #tpu.memory_space<vmem>>, vector<1x4x1xf32>
    %149 = vector.shape_cast %148 : vector<1x4x1xf32> to vector<4x1xf32>
    %150 = arith.mulf %147, %149 : vector<4x1xf32>
    %151 = vector.broadcast %150 : vector<4x1xf32> to vector<4x512xf32>
    %152 = arith.mulf %144, %151 : vector<4x512xf32>
    %c1_104 = arith.constant 1 : index
    %c0_105 = arith.constant 0 : index
    %c0_106 = arith.constant 0 : index
    %153 = vector.load %arg4[%c1_104, %c0_105, %c0_106] : memref<2x4x1xf32, #tpu.memory_space<vmem>>, vector<1x4x1xf32>
    %154 = vector.shape_cast %153 : vector<1x4x1xf32> to vector<4x1xf32>
    %155 = vector.broadcast %154 : vector<4x1xf32> to vector<4x512xf32>
    %156 = arith.addf %152, %155 : vector<4x512xf32>
    %cst_107 = arith.constant 0.000000e+00 : f32
    %157 = vector.broadcast %cst_107 : f32 to vector<4x512xf32>
    %158 = arith.maximumf %156, %157 : vector<4x512xf32>
    %159 = arith.addf %158, %0 : vector<4x512xf32>
    %cst_108 = arith.constant 0.000000e+00 : f32
    %160 = vector.broadcast %cst_108 : f32 to vector<4x512xf32>
    %161 = arith.maximumf %159, %160 : vector<4x512xf32>
    %c0_109 = arith.constant 0 : index
    %c0_110 = arith.constant 0 : index
    %162 = vector.load %arg6[%c0_109, %c0_110] : memref<4x512xf32, #tpu.memory_space<vmem>>, vector<4x512xf32>
    tpu.vector_store %arg6[%c0_109, %c0_110], %161 {strides = array<i32>} : memref<4x512xf32, #tpu.memory_space<vmem>>, vector<4x512xf32>,
    return
  }
}

</mosaic_0001>

<bundles_post_ra>
// kernel: tpu_custom_call.1
= control target key start
LH: loop header
LB: loop body
LE: loop exit
PB: predicated region body
PF: predicated region fallthrough
CT: control target
= control target key end

     0   :  { %11 = vsyncpa [#allocation4], 0  ;;  %s2089_s0 = inlined_call_operand.vmem [shape: f32[4,512], index: 0, kind: input, shape index: {}]   ;;  %s2090_s1 = inlined_call_operand.vmem [shape: f32[2,4,36], index: 1, kind: input, shape index: {}]   ;;  %s2091_s2 = inlined_call_operand.vmem [shape: f32[2,4,1], index: 2, kind: input, shape index: {}]   ;;  %s2092_s3 = inlined_call_operand.vmem [shape: f32[2,4,1], index: 3, kind: input, shape index: {}]   ;;  %s2093_s4 = inlined_call_operand.vmem [shape: f32[2,4,1], index: 4, kind: input, shape index: {}]   ;;  %s2094_s5 = inlined_call_operand.hbm [shape: f32[9,512], index: 5, kind: input, shape index: {}]   ;;  %s2095_s6 = inlined_call_operand.hbm [shape: f32[4,512], index: 6, kind: output, shape index: {}]  }
   0x1   :  { %12 = vsyncpa [#allocation5], 0  ;;  %s1537_s21 = smov [#allocation3]   ;;  %s1489_s25 = scalar_lea.hbm %s2094_s5, 1024 }
   0x2   :  { %s28_s22 = sshll.u32 %s1537_s21, 4  ;;  %p1490_p0 = scmp.ne.s32.totalorder %s2094_s5, %s1489_s25  ;;  %s29_s22 = int_to_ptr.vmem [resolvable:$true] %s28_s22 }
   0x3   :  { %p1493_p1 = scmp.lt.u32.totalorder %s1489_s25, %s2094_s5 }
   0x5   :  { %p1495_p2 = pnand %p1493_p1, %p1490_p0 }
   0x7   :  { %1498 = shalt.err (!%p1495_p2)
}
   0x8   :  { %s1499_s30 = scalar_lea.vmem %s29_s22, 1024  ;;  %p1504_p4 = scmp.lt.s32.totalorder %s29_s22, %s29_s22 }
   0x9   :  { %p1500_p3 = scmp.ne.s32.totalorder %s29_s22, %s1499_s30  ;;  %p1505_p5 = scmp.lt.s32.totalorder %s1499_s30, %s1499_s30 }
   0xb   :  { %p1506_p6 = por %p1505_p5, %p1504_p4 }
   0xd   :  { %p1507_p7 = pnand %p1506_p6, %p1500_p3 }
   0xf   :  { %1510 = shalt.err (!%p1507_p7)
}
  0x10   :  { %s1538_s7 = smov 512   ;;  %s1539_s8 = smov 32  }
  0x11   :  { %34 = dma.hbm_to_vmem [thread:$0]  %s2094_s5, 1024, %s29_s22, [#allocation4], %s1538_s7, %s1538_s7, %s1539_s8  }
  0x12   :  { %1533 = dma.done.wait [#allocation4], 1024  }
  0x13   :  { %1534 = vsyncadd [#allocation4], 4294966272  ;;  %v1601_v0 = vld [vmem:[%s2089_s0] sm:$0xff]  ;;  %s1540_s13 = smov 1   ;;  %s1541_s14 = smov 16   ;;  %v39_v2 = vld [vmem:[%s2089_s0 + $0x8] sm:$0xff]  ;;  %v54_v3 = vlaneseq }
  0x14   :  { %191 = vrot.lane.b32.xlu1 %v1601_v0, %s1540_s13  ;;  %91 = vrot.lane.b32.xlu0 %v1601_v0, %s1541_s14  ;;  %v1609_v1 = vcombine.high %v1601_v0, %v1601_v0  ;;  %v1618_v4 = vcombine.high %v39_v2, %v39_v2  ;;  %s1542_s16 = smov 17   ;;  %v248_v8 = vld [vmem:[#allocation3 + $0x4] ss:$8 sm:$0xf]  ;;  %s1543_s17 = smov 15   ;;  %v1548_v21 = vmov 0.0  }
  0x15   :  { %v64_v5 = vshrl.u32 %v54_v3, 7  ;;  %s1544_s18 = smov 127   ;;  %s1545_s19 = smov 112   ;;  %590 = vmatprep.mubr.f32.mxu0 %v1548_v21  ;;  %661 = vmatprep.mubr.f32.mxu1 %v1548_v21  ;;  %v1549_v22 = vmov 0   ;;  %v503_v23 = vld [vmem:[%s2091_s2] sm:$0xf] }
  0x16   :  { %s1546_s20 = smov 113   ;;  %s1547_s21 = smov 111   ;;  %1479 = vset.pattern.permute.xlu0 %v1549_v22  ;;  %1480 = vset.pattern.permute.xlu1 %v1549_v22  ;;  %v1688_v24 = vand.u32 127, %v54_v3  ;;  %v1690_v25 = vld [vmem:[#allocation3 + $0x3] ss:$8 sm:$0xf] }
  0x17   :  { %v1625_v6 = vsub.s32 0, %v64_v5  ;;  %v1627_v7 = vsub.s32 1, %v64_v5  ;;  %v1649_v14 = vsub.s32 2, %v64_v5  ;;  %v1651_v15 = vsub.s32 3, %v64_v5 }
  0x18   :  { %193 = vrot.lane.b32.xlu1 %v1609_v1, %s1540_s13  ;;  %93 = vrot.lane.b32.xlu0 %v1609_v1, %s1541_s14  ;;  %v105_v26 = vld [vmem:[#allocation3 + $0x1] ss:$8 sm:$0xf]  ;;  %vm199_vm0 = vcmp.lt.s32.totalorder %v1688_v24, 1  ;;  %vm99_vm1 = vcmp.lt.s32.totalorder %v1688_v24, 16  ;;  %vm56_vm2 = vcmp.lt.s32.totalorder %v1688_v24, 17 }
  0x19   :  { %v253_v9 = vrot.slane %v248_v8, %v1625_v6  ;;  %v257_v10 = vrot.slane %v248_v8, %v1627_v7  ;;  %v261_v16 = vrot.slane %v248_v8, %v1649_v14  ;;  %v265_v17 = vrot.slane %v248_v8, %v1651_v15  ;;  %v1704_v39 = vld [vmem:[#allocation3] ss:$8 sm:$0xf]  ;;  %v1713_v49 = vld [vmem:[#allocation3 + $0x2] ss:$8 sm:$0xf] }
  0x1a   :  { %v214_v29 = vrot.slane %v1690_v25, %v1627_v7  ;;  %v114_v30 = vrot.slane %v105_v26, %v1627_v7  ;;  %v210_v37 = vrot.slane %v1690_v25, %v1625_v6  ;;  %v110_v38 = vrot.slane %v105_v26, %v1625_v6 }
  0x1b   :  { %v266_v11 = vcombine.low %v253_v9, %v257_v10  ;;  %v267_v18 = vcombine.low %v261_v16, %v265_v17  ;;  %v70_v48 = vrot.slane %v1704_v39, %v1627_v7  ;;  %vm155_vm3 = vcmp.lt.s32.totalorder %v1688_v24, 15  ;;  %v1747_v17 = vld [vmem:[#allocation3 + $0x5] ss:$8 sm:$0xf] }
  0x1c   :  { %197 = vrot.lane.b32.xlu1 %v1618_v4, %s1540_s13  ;;  %97 = vrot.lane.b32.xlu0 %v1618_v4, %s1541_s14  ;;  %v170_v56 = vrot.slane %v1713_v49, %v1627_v7  ;;  %v118_v61 = vrot.slane %v105_v26, %v1649_v14  ;;  %v122_v62 = vrot.slane %v105_v26, %v1651_v15  ;;  %vm290_vm4 = vcmp.lt.s32.totalorder %v1688_v24, 127 }
  0x1d   :  { %v270_v12 = vmul.f32 %v266_v11, %v1601_v0  ;;  %v271_v19 = vmul.f32 %v267_v18, %v39_v2  ;;  %v66_v63 = vrot.slane %v1704_v39, %v1625_v6  ;;  %v218_v3 = vrot.slane %v1690_v25, %v1649_v14 }
  0x1e   :  { %v222_v10 = vrot.slane %v1690_v25, %v1651_v15  ;;  %v166_v16 = vrot.slane %v1713_v49, %v1625_v6  ;;  %vm390_vm5 = vcmp.lt.s32.totalorder %v1688_v24, 112  ;;  %vm346_vm6 = vcmp.lt.s32.totalorder %v1688_v24, 113 }
  0x1f   :  { %v274_v13 = vcombine.high %v270_v12, %v270_v12  ;;  %278 = vst [vmem:[#allocation2 + $0x40] sm:$0xf] %v270_v12  ;;  %280 = vst [vmem:[#allocation2 + $0x50] sm:$0xf] %v271_v19  ;;  %v275_v20 = vcombine.high %v271_v19, %v271_v19  ;;  %vm446_vm7 = vcmp.lt.s32.totalorder %v1688_v24, 111  ;;  %vm513_vm8 = vcmask 1043456  }
  0x20   :  { %48 = vrot.lane.b32.xlu1 %v1609_v1, %s1542_s16  ;;  %46 = vrot.lane.b32.xlu0 %v1601_v0, %s1542_s16  ;;  %vm509_vm9 = vcmask 293888  }
  0x21   :  { %279 = vst [vmem:[#allocation2 + $0x48] sm:$0xf] %v274_v13  ;;  %281 = vst [vmem:[#allocation2 + $0x58] sm:$0xf] %v275_v20 }
  0x24   :  { %149 = vrot.lane.b32.xlu1 %v1609_v1, %s1543_s17  ;;  %147 = vrot.lane.b32.xlu0 %v1601_v0, %s1543_s17 }
  0x28   :  { %95 = vrot.lane.b32.xlu1 %v39_v2, %s1541_s14  ;;  %52 = vrot.lane.b32.xlu0 %v1618_v4, %s1542_s16 }
  0x2c   :  { %195 = vrot.lane.b32.xlu1 %v39_v2, %s1540_s13  ;;  %153 = vrot.lane.b32.xlu0 %v1618_v4, %s1543_s17 }
  0x30   :  { %286 = vrot.lane.b32.xlu1 %v39_v2, %s1544_s18  ;;  %284 = vrot.lane.b32.xlu0 %v1609_v1, %s1544_s18 }
  0x34   :  { %386 = vrot.lane.b32.xlu1 %v39_v2, %s1545_s19  ;;  %384 = vrot.lane.b32.xlu0 %v1609_v1, %s1545_s19 }
  0x38   :  { %151 = vrot.lane.b32.xlu1 %v39_v2, %s1543_s17  ;;  %50 = vrot.lane.b32.xlu0 %v39_v2, %s1542_s16 }
  0x3c   :  { %382 = vrot.lane.b32.xlu1 %v1601_v0, %s1545_s19  ;;  %282 = vrot.lane.b32.xlu0 %v1601_v0, %s1544_s18 }
  0x40   :  { %342 = vrot.lane.b32.xlu1 %v39_v2, %s1546_s20  ;;  %340 = vrot.lane.b32.xlu0 %v1609_v1, %s1546_s20 }
  0x44   :  { %338 = vrot.lane.b32.xlu1 %v1601_v0, %s1546_s20  ;;  %288 = vrot.lane.b32.xlu0 %v1618_v4, %s1544_s18 }
  0x48   :  { %344 = vrot.lane.b32.xlu1 %v1618_v4, %s1546_s20  ;;  %388 = vrot.lane.b32.xlu0 %v1618_v4, %s1545_s19 }
  0x4c   :  { %442 = vrot.lane.b32.xlu1 %v39_v2, %s1547_s21  ;;  %440 = vrot.lane.b32.xlu0 %v1609_v1, %s1547_s21 }
  0x50   :  { %444 = vrot.lane.b32.xlu1 %v1618_v4, %s1547_s21  ;;  %438 = vrot.lane.b32.xlu0 %v1601_v0, %s1547_s21 }
  0x54   :  { %506 = vperm.xlu0 %1479, %v503_v23  }
  0x86   :  { %v192_v27 = vpop.permute.xlu1 %191  ;;  %v92_v28 = vpop.permute.xlu0 %91 }
  0x8a   :  { %v194_v31 = vpop.permute.xlu1 %193  ;;  %v94_v32 = vpop.permute.xlu0 %93 }
  0x8b   :  { %v202_v33 = vsel %vm199_vm0, %v192_v27, %v194_v31  ;;  %v102_v34 = vsel %vm99_vm1, %v92_v28, %v94_v32 }
  0x8c   :  { %v228_v35 = vmul.f32 %v214_v29, %v202_v33  ;;  %v128_v36 = vmul.f32 %v114_v30, %v102_v34  ;;  %v305_v30 = vrot.slane %v1747_v17, %v1627_v7  ;;  %v1758_v34 = vld [vmem:[#allocation3 + $0x7] ss:$8 sm:$0xf] }
  0x8e   :  { %v236_v40 = vrot.slane %v228_v35, 4  ;;  %v136_v41 = vrot.slane %v128_v36, 4  ;;  %v198_v42 = vpop.permute.xlu1 %197  ;;  %v98_v43 = vpop.permute.xlu0 %97 }
  0x8f   :  { %v203_v44 = vsel %vm199_vm0, %v198_v42, %v192_v27  ;;  %v103_v45 = vsel %vm99_vm1, %v98_v43, %v92_v28 }
  0x90   :  { %244 = vst [vmem:[#allocation2 + $0x28] sm:$0xf0] %v236_v40  ;;  %144 = vst [vmem:[#allocation2 + $0x8] sm:$0xf0] %v136_v41  ;;  %v227_v46 = vmul.f32 %v210_v37, %v203_v44  ;;  %v127_v47 = vmul.f32 %v110_v38, %v103_v45 }
  0x92   :  { %v235_v50 = vrot.slane %v227_v46, 4  ;;  %v135_v51 = vrot.slane %v127_v47, 4  ;;  %v1715_v52 = vpop.permute.xlu1 %48  ;;  %v47_v53 = vpop.permute.xlu0 %46  ;;  %v174_v47 = vrot.slane %v1713_v49, %v1649_v14 }
  0x93   :  { %v59_v54 = vsel %vm56_vm2, %v47_v53, %v1715_v52 }
  0x94   :  { %243 = vst [vmem:[#allocation2 + $0x20] sm:$0xf0] %v235_v50  ;;  %143 = vst [vmem:[#allocation2] sm:$0xf0] %v135_v51  ;;  %v84_v55 = vmul.f32 %v70_v48, %v59_v54  ;;  %v178_v50 = vrot.slane %v1713_v49, %v1651_v15  ;;  %v74_v51 = vrot.slane %v1704_v39, %v1649_v14 }
  0x96   :  { %88 = vst [vmem:[#allocation2 + $0x8] sm:$0xf] %v84_v55  ;;  %v1723_v57 = vpop.permute.xlu1 %149  ;;  %v148_v58 = vpop.permute.xlu0 %147 }
  0x97   :  { %v158_v59 = vsel %vm155_vm3, %v148_v58, %v1723_v57 }
  0x98   :  { %v184_v60 = vmul.f32 %v170_v56, %v158_v59 }
  0x9a   :  { %188 = vst [vmem:[#allocation2 + $0x28] sm:$0xf] %v184_v60  ;;  %v96_v0 = vpop.permute.xlu1 %95  ;;  %v1732_v2 = vpop.permute.xlu0 %52 }
  0x9b   :  { %v100_v5 = vsel %vm99_vm1, %v96_v0, %v98_v43  ;;  %v101_v8 = vsel %vm99_vm1, %v94_v32, %v96_v0  ;;  %v60_v9 = vsel %vm56_vm2, %v1732_v2, %v47_v53  ;;  %v78_v53 = vrot.slane %v1704_v39, %v1651_v15 }
  0x9c   :  { %v129_v11 = vmul.f32 %v118_v61, %v101_v8  ;;  %v130_v12 = vmul.f32 %v122_v62, %v100_v5  ;;  %v83_v13 = vmul.f32 %v66_v63, %v60_v9  ;;  %v401_v61 = vrot.slane %v1758_v34, %v1625_v6 }
  0x9d   :  { %v484_v32 = vld [vmem:[#allocation2 + $0x8] sm:$0xff]  ;;  %v301_v62 = vrot.slane %v1747_v17, %v1625_v6 }
  0x9e   :  { %v137_v18 = vrot.slane %v129_v11, 4  ;;  %v138_v19 = vrot.slane %v130_v12, 4  ;;  %87 = vst [vmem:[#allocation2] sm:$0xf] %v83_v13  ;;  %v196_v20 = vpop.permute.xlu1 %195  ;;  %v154_v22 = vpop.permute.xlu0 %153 }
  0x9f   :  { %v200_v23 = vsel %vm199_vm0, %v196_v20, %v198_v42  ;;  %v201_v26 = vsel %vm199_vm0, %v194_v31, %v196_v20  ;;  %v159_v25 = vsel %vm155_vm3, %v154_v22, %v148_v58  ;;  %v405_v42 = vrot.slane %v1758_v34, %v1627_v7 }
  0xa0   :  { %145 = vst [vmem:[#allocation2 + $0x10] sm:$0xf0] %v137_v18  ;;  %146 = vst [vmem:[#allocation2 + $0x18] sm:$0xf0] %v138_v19  ;;  %v229_v27 = vmul.f32 %v218_v3, %v201_v26  ;;  %v230_v28 = vmul.f32 %v222_v10, %v200_v23  ;;  %v183_v29 = vmul.f32 %v166_v16, %v159_v25 }
  0xa1   :  { %v488_v33 = vld [vmem:[#allocation2 + $0x28] sm:$0xff] }
  0xa2   :  { %v237_v35 = vrot.slane %v229_v27, 4  ;;  %v238_v36 = vrot.slane %v230_v28, 4  ;;  %187 = vst [vmem:[#allocation2 + $0x20] sm:$0xf] %v183_v29  ;;  %v1760_v31 = vpop.permute.xlu1 %286  ;;  %v285_v37 = vpop.permute.xlu0 %284  ;;  %v1433_v38 = vpack.c.bf16 %v488_v33, %v484_v32  ;;  %v309_v27 = vrot.slane %v1747_v17, %v1649_v14 }
  0xa3   :  { %v292_v40 = vsel %vm290_vm4, %v285_v37, %v1760_v31  ;;  %v352_v10 = vld [vmem:[#allocation3 + $0x6] ss:$8 sm:$0xf]  ;;  %v313_v28 = vrot.slane %v1747_v17, %v1651_v15 }
  0xa4   :  { %245 = vst [vmem:[#allocation2 + $0x30] sm:$0xf0] %v237_v35  ;;  %246 = vst [vmem:[#allocation2 + $0x38] sm:$0xf0] %v238_v36  ;;  %v319_v41 = vmul.f32 %v305_v30, %v292_v40  ;;  %1434 = vmatprep.subr.bf16.mxu0 %v1433_v38  ;;  %v361_v16 = vrot.slane %v352_v10, %v1627_v7  ;;  %v357_v25 = vrot.slane %v352_v10, %v1625_v6 }
  0xa5   :  { %v483_v54 = vld [vmem:[#allocation2] sm:$0xff]  ;;  %v365_v38 = vrot.slane %v352_v10, %v1649_v14  ;;  %v369_v40 = vrot.slane %v352_v10, %v1651_v15 }
  0xa6   :  { %v327_v43 = vrot.slane %v319_v41, 4  ;;  %v1768_v44 = vpop.permute.xlu1 %386  ;;  %v385_v45 = vpop.permute.xlu0 %384  ;;  %v409_v41 = vrot.slane %v1758_v34, %v1649_v14 }
  0xa7   :  { %v392_v46 = vsel %vm390_vm5, %v385_v45, %v1768_v44 }
  0xa8   :  { %335 = vst [vmem:[#allocation2 + $0x48] sm:$0xf0] %v327_v43  ;;  %v419_v48 = vmul.f32 %v405_v42, %v392_v46  ;;  %v452_v46 = vld [vmem:[#allocation3 + $0x20] ss:$8 sm:$0xf] }
  0xa9   :  { %v487_v55 = vld [vmem:[#allocation2 + $0x20] sm:$0xff] }
  0xaa   :  { %v427_v56 = vrot.slane %v419_v48, 4  ;;  %v152_v58 = vpop.permute.xlu1 %151  ;;  %v51_v59 = vpop.permute.xlu0 %50  ;;  %v1435_v60 = vpack.c.bf16 %v487_v55, %v483_v54 }
  0xab   :  { %v156_v49 = vsel %vm155_vm3, %v152_v58, %v154_v22  ;;  %v157_v63 = vsel %vm155_vm3, %v1723_v57, %v152_v58  ;;  %v57_v39 = vsel %vm56_vm2, %v51_v59, %v1732_v2  ;;  %v58_v0 = vsel %vm56_vm2, %v1715_v52, %v51_v59 }
  0xac   :  { %435 = vst [vmem:[#allocation2 + $0x68] sm:$0xf0] %v427_v56  ;;  %v185_v3 = vmul.f32 %v174_v47, %v157_v63  ;;  %v186_v5 = vmul.f32 %v178_v50, %v156_v49  ;;  %v85_v8 = vmul.f32 %v74_v51, %v58_v0  ;;  %v86_v9 = vmul.f32 %v78_v53, %v57_v39 }
  0xad   :  { %1436 = vmatpush1.bf16.msra.mxu0 %v1435_v60  ;;  %v413_v51 = vrot.slane %v1758_v34, %v1651_v15 }
  0xae   :  { %189 = vst [vmem:[#allocation2 + $0x30] sm:$0xf] %v185_v3  ;;  %190 = vst [vmem:[#allocation2 + $0x38] sm:$0xf] %v186_v5  ;;  %v383_v57 = vpop.permute.xlu1 %382  ;;  %v283_v11 = vpop.permute.xlu0 %282 }
  0xaf   :  { %89 = vst [vmem:[#allocation2 + $0x10] sm:$0xf] %v85_v8  ;;  %90 = vst [vmem:[#allocation2 + $0x18] sm:$0xf] %v86_v9  ;;  %v393_v2 = vsel %vm390_vm5, %v383_v57, %v385_v45  ;;  %v293_v12 = vsel %vm290_vm4, %v283_v11, %v285_v37  ;;  %v492_v39 = vld [vmem:[#allocation2 + $0x48] sm:$0xff] }
  0xb0   :  { %v418_v52 = vmul.f32 %v401_v61, %v393_v2  ;;  %v318_v13 = vmul.f32 %v301_v62, %v293_v12  ;;  %v457_v2 = vrot.slane %v452_v46, %v1625_v6  ;;  %v469_v12 = vrot.slane %v452_v46, %v1651_v15 }
  0xb2   :  { %v426_v18 = vrot.slane %v418_v52, 4  ;;  %v326_v19 = vrot.slane %v318_v13, 4  ;;  %v343_v20 = vpop.permute.xlu1 %342  ;;  %v341_v22 = vpop.permute.xlu0 %340 }
  0xb3   :  { %v348_v23 = vsel %vm346_vm6, %v341_v22, %v343_v20 }
  0xb4   :  { %434 = vst [vmem:[#allocation2 + $0x60] sm:$0xf0] %v426_v18  ;;  %334 = vst [vmem:[#allocation2 + $0x40] sm:$0xf0] %v326_v19  ;;  %v375_v26 = vmul.f32 %v361_v16, %v348_v23 }
  0xb5   :  { %v490_v30 = vld [vmem:[#allocation2 + $0x38] sm:$0xff]  ;;  %v489_v37 = vld [vmem:[#allocation2 + $0x30] sm:$0xff] }
  0xb6   :  { %v486_v29 = vld [vmem:[#allocation2 + $0x18] sm:$0xff]  ;;  %v485_v32 = vld [vmem:[#allocation2 + $0x10] sm:$0xff]  ;;  %379 = vst [vmem:[#allocation2 + $0x68] sm:$0xf] %v375_v26  ;;  %v339_v33 = vpop.permute.xlu1 %338  ;;  %v289_v35 = vpop.permute.xlu0 %288 }
  0xb7   :  { %v1441_v36 = vpack.c.bf16 %v490_v30, %v486_v29  ;;  %v349_v42 = vsel %vm346_vm6, %v339_v33, %v341_v22  ;;  %v291_v17 = vsel %vm290_vm4, %v1760_v31, %v289_v35  ;;  %v294_v43 = vsel %vm290_vm4, %v289_v35, %v283_v11 }
  0xb8   :  { %v1443_v45 = vpack.c.bf16 %v489_v37, %v485_v32  ;;  %v374_v47 = vmul.f32 %v357_v25, %v349_v42  ;;  %v320_v48 = vmul.f32 %v309_v27, %v291_v17  ;;  %v321_v50 = vmul.f32 %v313_v28, %v294_v43  ;;  %v482_v37 = vld [vmem:[%s2090_s1] sm:$0xf] }
  0xb9   :  { %1442 = vmatprep.subr.bf16.mxu1 %v1441_v36  ;;  %v461_v31 = vrot.slane %v452_v46, %v1627_v7  ;;  %v465_v11 = vrot.slane %v452_v46, %v1649_v14 }
  0xba   :  { %1444 = vmatpush1.bf16.msra.mxu1 %v1443_v45  ;;  %378 = vst [vmem:[#allocation2 + $0x60] sm:$0xf] %v374_v47  ;;  %v328_v53 = vrot.slane %v320_v48, 4  ;;  %v329_v54 = vrot.slane %v321_v50, 4  ;;  %v345_v55 = vpop.permute.xlu1 %344  ;;  %v389_v56 = vpop.permute.xlu0 %388 }
  0xbb   :  { %v347_v58 = vsel %vm346_vm6, %v343_v20, %v345_v55  ;;  %v350_v59 = vsel %vm346_vm6, %v345_v55, %v339_v33  ;;  %v391_v34 = vsel %vm390_vm5, %v1768_v44, %v389_v56  ;;  %v394_v60 = vsel %vm390_vm5, %v389_v56, %v383_v57  ;;  %v491_v52 = vld [vmem:[#allocation2 + $0x40] sm:$0xff] }
  0xbc   :  { %336 = vst [vmem:[#allocation2 + $0x50] sm:$0xf0] %v328_v53  ;;  %337 = vst [vmem:[#allocation2 + $0x58] sm:$0xf0] %v329_v54  ;;  %v376_v61 = vmul.f32 %v365_v38, %v347_v58  ;;  %v377_v62 = vmul.f32 %v369_v40, %v350_v59  ;;  %v420_v49 = vmul.f32 %v409_v41, %v391_v34 }
  0xbd   :  { %v421_v63 = vmul.f32 %v413_v51, %v394_v60  ;;  %v496_v0 = vld [vmem:[#allocation2 + $0x68] sm:$0xff] }
  0xbe   :  { %380 = vst [vmem:[#allocation2 + $0x70] sm:$0xf] %v376_v61  ;;  %381 = vst [vmem:[#allocation2 + $0x78] sm:$0xf] %v377_v62  ;;  %v428_v3 = vrot.slane %v420_v49, 4  ;;  %v443_v8 = vpop.permute.xlu1 %442  ;;  %v441_v9 = vpop.permute.xlu0 %440  ;;  %v1437_v10 = vpack.c.bf16 %v496_v0, %v492_v39 }
  0xbf   :  { %v429_v5 = vrot.slane %v421_v63, 4  ;;  %v448_v44 = vsel %vm446_vm7, %v441_v9, %v443_v8 }
  0xc0   :  { %436 = vst [vmem:[#allocation2 + $0x70] sm:$0xf0] %v428_v3  ;;  %v475_v57 = vmul.f32 %v461_v31, %v448_v44  ;;  %1438 = vmatprep.subr.bf16.mxu0 %v1437_v10 }
  0xc1   :  { %437 = vst [vmem:[#allocation2 + $0x78] sm:$0xf0] %v429_v5  ;;  %v495_v13 = vld [vmem:[#allocation2 + $0x60] sm:$0xff] }
  0xc2   :  { %479 = vst [vmem:[#allocation2 + $0x88] sm:$0xf] %v475_v57  ;;  %v445_v16 = vpop.permute.xlu1 %444  ;;  %v439_v18 = vpop.permute.xlu0 %438  ;;  %v1439_v19 = vpack.c.bf16 %v495_v13, %v491_v52  ;;  %v700_v52 = vld [vmem:[%s2092_s3] sm:$0xf] }
  0xc3   :  { %v447_v20 = vsel %vm446_vm7, %v443_v8, %v445_v16  ;;  %v449_v22 = vsel %vm446_vm7, %v439_v18, %v441_v9  ;;  %v450_v23 = vsel %vm446_vm7, %v445_v16, %v439_v18  ;;  %v494_v28 = vld [vmem:[#allocation2 + $0x58] sm:$0xff]  ;;  %v493_v30 = vld [vmem:[#allocation2 + $0x50] sm:$0xff]  ;;  %v711_v8 = vld [vmem:[%s2093_s4] sm:$0xf] }
  0xc4   :  { %v476_v26 = vmul.f32 %v465_v11, %v447_v20  ;;  %v474_v25 = vmul.f32 %v457_v2, %v449_v22  ;;  %v477_v27 = vmul.f32 %v469_v12, %v450_v23  ;;  %1440 = vmatpush1.bf16.msra.mxu0 %v1439_v19  ;;  %v917_v23 = vld [vmem:[#allocation3 + $0x4] ss:$8 sm:$0xf] }
  0xc6   :  { %480 = vst [vmem:[#allocation2 + $0x90] sm:$0xf] %v476_v26  ;;  %478 = vst [vmem:[#allocation2 + $0x80] sm:$0xf] %v474_v25 }
  0xc7   :  { %481 = vst [vmem:[#allocation2 + $0x98] sm:$0xf] %v477_v27  ;;  %v497_v32 = vld [vmem:[#allocation2 + $0x70] sm:$0xff] }
  0xc8   :  { %v498_v29 = vld [vmem:[#allocation2 + $0x78] sm:$0xff]  ;;  %v1447_v35 = vpack.c.bf16 %v497_v32, %v493_v30  ;;  %v926_v32 = vrot.slane %v917_v23, %v1627_v7 }
  0xc9   :  { %v1445_v33 = vpack.c.bf16 %v498_v29, %v494_v28  ;;  %v500_v36 = vld [vmem:[#allocation2 + $0x88] sm:$0xf] }
  0xca   :  { %1417 = vmatprep.subr.msk.mxu0 %vm513_vm8, %v500_v36 }
  0xcb   :  { %1446 = vmatprep.subr.bf16.mxu1 %v1445_v33  ;;  %v922_v33 = vrot.slane %v917_v23, %v1625_v6 }
  0xcc   :  { %1448 = vmatpush1.bf16.msra.mxu1 %v1447_v35  ;;  %v934_v35 = vrot.slane %v917_v23, %v1651_v15 }
  0xcd   :  { %v499_v38 = vld [vmem:[#allocation2 + $0x80] sm:$0xf]  ;;  %v501_v41 = vld [vmem:[#allocation2 + $0x90] sm:$0xf] }
  0xce   :  { %v502_v40 = vld [vmem:[#allocation2 + $0x98] sm:$0xf]  ;;  %1418 = vmatpush1.msk.msra.mxu0 %vm513_vm8, %v499_v38 }
  0xcf   :  { %1420 = vmatprep.subr.msk.mxu1 %vm513_vm8, %v502_v40  ;;  %1419 = vmatmul.mubr.msk.f32.vlgmr.msra.gmra.mrb[0].mxu0 %vm509_vm9, %v482_v37 }
  0xd0   :  { %1421 = vmatpush1.msk.msra.mxu1 %vm513_vm8, %v501_v41  ;;  %1247 = vmatprep.mubr.f32.mxu0 %v1548_v21  ;;  %v930_v41 = vrot.slane %v917_v23, %v1649_v14 }
  0xd1   :  { %1422 = vmatmul.mubr.msk.f32.vlgmr.msra.gmra.mrb[0].mxu1 %vm509_vm9, %v482_v37 }
  0xd2   :  { %1318 = vmatprep.mubr.f32.mxu1 %v1548_v21 }
  0xd3   :  { %v507_v42 = vpop.permute.xlu0 %506 }
 0x1a2   :  { %v592_v17 = vpop.f32.mrb[0].mxu0 }
 0x1a3   :  { %v593_v43 = vadd.f32 %v592_v17, %v507_v42  ;;  %v594_v45 = vpop.f32.mrb[1].mxu0 }
 0x1a4   :  { %v663_v46 = vpop.f32.mrb[0].mxu1  ;;  %v595_v47 = vadd.f32 %v594_v45, %v507_v42 }
 0x1a5   :  { %v664_v48 = vadd.f32 %v663_v46, %v507_v42  ;;  %v665_v50 = vpop.f32.mrb[1].mxu1  ;;  %v668_v53 = vsel %vm513_vm8, %v593_v43, 0.0  ;;  %v677_v54 = vmul.f32 %v593_v43, %v593_v43 }
 0x1a6   :  { %v666_v51 = vadd.f32 %v665_v50, %v507_v42  ;;  %v669_v55 = vsel %vm513_vm8, %v595_v47, 0.0  ;;  %v678_v56 = vmul.f32 %v595_v47, %v595_v47 }
 0x1a7   :  { %v679_v31 = vmul.f32 %v664_v48, %v664_v48  ;;  %v670_v58 = vadd.f32 %v669_v55, %v668_v53  ;;  %v681_v59 = vsel %vm513_vm8, %v677_v54, 0.0  ;;  %v671_v21 = vsel %vm513_vm8, %v664_v48, 0.0  ;;  %v779_v53 = vld [vmem:[#allocation3 + $0x1] ss:$8 sm:$0xf] }
 0x1a8   :  { %v680_v34 = vmul.f32 %v666_v51, %v666_v51  ;;  %v682_v60 = vsel %vm513_vm8, %v678_v56, 0.0  ;;  %v673_v49 = vsel %vm513_vm8, %v666_v51, 0.0  ;;  %v784_v56 = vrot.slane %v779_v53, %v1625_v6 }
 0x1a9   :  { %v672_v61 = vadd.f32 %v671_v21, %v670_v58  ;;  %v683_v62 = vadd.f32 %v682_v60, %v681_v59  ;;  %v684_v63 = vsel %vm513_vm8, %v679_v31, 0.0  ;;  %v788_v31 = vrot.slane %v779_v53, %v1627_v7  ;;  %v1910_v58 = vld [vmem:[#allocation3 + $0x3] ss:$8 sm:$0xf] }
 0x1aa   :  { %v686_v3 = vsel %vm513_vm8, %v680_v34, 0.0 }
 0x1ab   :  { %v674_v39 = vadd.f32 %v673_v49, %v672_v61  ;;  %v685_v0 = vadd.f32 %v684_v63, %v683_v62  ;;  %v884_v49 = vrot.slane %v1910_v58, %v1627_v7 }
 0x1ad   :  { %675 = vadd.xlane.f32.xlu1 %v674_v39  ;;  %v687_v5 = vadd.f32 %v686_v3, %v685_v0 }
 0x1af   :  { %688 = vadd.xlane.f32.xlu0 %v687_v5 }
 0x1c5   :  { %714 = vperm.xlu0 %1479, %v711_v8  }
 0x23a   :  { %v676_v9 = vpop.xlane.xlu1 %675 }
 0x23b   :  { %v690_v10 = vmul.f32 0.001953125, %v676_v9  ;;  %v880_v9 = vrot.slane %v1910_v58, %v1625_v6 }
 0x23c   :  { %v689_v44 = vpop.xlane.xlu0 %688 }
 0x23d   :  { %v691_v57 = vmul.f32 0.001953125, %v689_v44  ;;  %v692_v11 = vmul.f32 %v690_v10, %v690_v10  ;;  %v694_v18 = vsub.f32 %v593_v43, %v690_v10  ;;  %v695_v19 = vsub.f32 %v595_v47, %v690_v10 }
 0x23e   :  { %v696_v20 = vsub.f32 %v664_v48, %v690_v10  ;;  %v697_v22 = vsub.f32 %v666_v51, %v690_v10  ;;  %v1424_v51 = vld [vmem:[%s2091_s2 + $0x4] sm:$0xf]  ;;  %v1922_v10 = vld [vmem:[#allocation3] ss:$8 sm:$0xf] }
 0x23f   :  { %v693_v2 = vsub.f32 %v691_v57, %v692_v11 }
 0x241   :  { %v698_v12 = vadd.f32 1e-05, %v693_v2 }
 0x243   :  { %1483 = vrsqrt.f32 %v698_v12 }
 0x244   :  { %v715_v30 = vpop.permute.xlu0 %714 }
 0x24d   :  { %v1484_v13 = vpop.eup %1483 }
 0x24e   :  { %v701_v16 = vmul.f32 %v1484_v13, %v700_v52  ;;  %v742_v52 = vrot.slane %v1922_v10, %v1625_v6  ;;  %v746_v13 = vrot.slane %v1922_v10, %v1627_v7 }
 0x250   :  { %704 = vperm.xlu1 %1480, %v701_v16   ;;  %v1930_v16 = vld [vmem:[#allocation3 + $0x2] ss:$8 sm:$0xf] }
 0x2cf   :  { %v705_v26 = vpop.permute.xlu1 %704 }
 0x2d0   :  { %v707_v25 = vmul.f32 %v705_v26, %v694_v18  ;;  %v708_v27 = vmul.f32 %v705_v26, %v695_v19  ;;  %v709_v28 = vmul.f32 %v705_v26, %v696_v20  ;;  %v710_v29 = vmul.f32 %v705_v26, %v697_v22 }
 0x2d2   :  { %v717_v36 = vadd.f32 %v715_v30, %v707_v25  ;;  %v718_v37 = vadd.f32 %v715_v30, %v708_v27  ;;  %v719_v38 = vadd.f32 %v715_v30, %v709_v28  ;;  %v720_v40 = vadd.f32 %v715_v30, %v710_v29 }
 0x2d3   :  { %v838_v27 = vrot.slane %v1930_v16, %v1625_v6  ;;  %v842_v28 = vrot.slane %v1930_v16, %v1627_v7 }
 0x2d4   :  { %v721_v42 = vmax.f32 %v717_v36, 0.0  ;;  %v722_v17 = vmax.f32 %v718_v37, 0.0  ;;  %v723_v43 = vmax.f32 %v719_v38, 0.0  ;;  %v724_v45 = vmax.f32 %v720_v40, 0.0 }
 0x2d5   :  { %v792_v37 = vrot.slane %v779_v53, %v1649_v14  ;;  %v796_v38 = vrot.slane %v779_v53, %v1651_v15 }
 0x2d6   :  { %863 = vrot.lane.b32.xlu0 %v721_v42, %s1540_s13  ;;  %767 = vrot.lane.b32.xlu1 %v721_v42, %s1541_s14  ;;  %v940_v46 = vmul.f32 %v926_v32, %v722_v17  ;;  %v939_v47 = vmul.f32 %v922_v33, %v721_v42  ;;  %v942_v48 = vmul.f32 %v934_v35, %v724_v45 }
 0x2d7   :  { %v941_v50 = vmul.f32 %v930_v41, %v723_v43 }
 0x2d8   :  { %944 = vst [vmem:[#allocation2 + $0x48] sm:$0xf] %v940_v46  ;;  %943 = vst [vmem:[#allocation2 + $0x40] sm:$0xf] %v939_v47  ;;  %v888_v46 = vrot.slane %v1910_v58, %v1649_v14  ;;  %v892_v47 = vrot.slane %v1910_v58, %v1651_v15 }
 0x2d9   :  { %946 = vst [vmem:[#allocation2 + $0x58] sm:$0xf] %v942_v48  ;;  %945 = vst [vmem:[#allocation2 + $0x50] sm:$0xf] %v941_v50 }
 0x2da   :  { %773 = vrot.lane.b32.xlu0 %v724_v45, %s1541_s14  ;;  %769 = vrot.lane.b32.xlu1 %v722_v17, %s1541_s14  ;;  %v1960_v48 = vld [vmem:[#allocation3 + $0x5] ss:$8 sm:$0xf] }
 0x2de   :  { %725 = vrot.lane.b32.xlu0 %v721_v42, %s1542_s16  ;;  %865 = vrot.lane.b32.xlu1 %v722_v17, %s1540_s13 }
 0x2e2   :  { %821 = vrot.lane.b32.xlu0 %v721_v42, %s1543_s17  ;;  %869 = vrot.lane.b32.xlu1 %v724_v45, %s1540_s13 }
 0x2e6   :  { %731 = vrot.lane.b32.xlu0 %v724_v45, %s1542_s16  ;;  %727 = vrot.lane.b32.xlu1 %v722_v17, %s1542_s16 }
 0x2ea   :  { %827 = vrot.lane.b32.xlu0 %v724_v45, %s1543_s17  ;;  %823 = vrot.lane.b32.xlu1 %v722_v17, %s1543_s17 }
 0x2ee   :  { %949 = vrot.lane.b32.xlu0 %v722_v17, %s1544_s18  ;;  %771 = vrot.lane.b32.xlu1 %v723_v43, %s1541_s14  ;;  %s1550_s14 = smov [#allocation6]  }
 0x2ef   :  { %s1408_s5 = sshll.u32 %s1550_s14, 4  ;;  %s1409_s5 = int_to_ptr.vmem [resolvable:$true] %s1408_s5 }
 0x2f0   :  { %s1511_s15 = scalar_lea.vmem %s1409_s5, 256  ;;  %p1516_p9 = scmp.lt.s32.totalorder %s1409_s5, %s1409_s5 }
 0x2f1   :  { %p1512_p8 = scmp.ne.s32.totalorder %s1409_s5, %s1511_s15  ;;  %p1517_p10 = scmp.lt.s32.totalorder %s1511_s15, %s1511_s15 }
 0x2f2   :  { %1045 = vrot.lane.b32.xlu0 %v722_v17, %s1545_s19  ;;  %867 = vrot.lane.b32.xlu1 %v723_v43, %s1540_s13 }
 0x2f3   :  { %p1518_p11 = por %p1517_p10, %p1516_p9 }
 0x2f5   :  { %p1519_p12 = pnand %p1518_p11, %p1512_p8 }
 0x2f6   :  { %729 = vrot.lane.b32.xlu0 %v723_v43, %s1542_s16  ;;  %951 = vrot.lane.b32.xlu1 %v723_v43, %s1544_s18 }
 0x2fa   :  { %947 = vrot.lane.b32.xlu0 %v721_v42, %s1544_s18  ;;  %1047 = vrot.lane.b32.xlu1 %v723_v43, %s1545_s19 }
 0x2fe   :  { %1003 = vrot.lane.b32.xlu0 %v722_v17, %s1546_s20  ;;  %825 = vrot.lane.b32.xlu1 %v723_v43, %s1543_s17 }
 0x302   :  { %953 = vrot.lane.b32.xlu0 %v724_v45, %s1544_s18  ;;  %1043 = vrot.lane.b32.xlu1 %v721_v42, %s1545_s19 }
 0x306   :  { %1049 = vrot.lane.b32.xlu0 %v724_v45, %s1545_s19  ;;  %1005 = vrot.lane.b32.xlu1 %v723_v43, %s1546_s20 }
 0x30a   :  { %1099 = vrot.lane.b32.xlu0 %v722_v17, %s1547_s21  ;;  %1001 = vrot.lane.b32.xlu1 %v721_v42, %s1546_s20 }
 0x30e   :  { %1097 = vrot.lane.b32.xlu0 %v721_v42, %s1547_s21  ;;  %1007 = vrot.lane.b32.xlu1 %v724_v45, %s1546_s20 }
 0x312   :  { %1165 = vperm.xlu0 %1479, %v1424_v51   ;;  %1101 = vrot.lane.b32.xlu1 %v723_v43, %s1547_s21 }
 0x316   :  { %1103 = vrot.lane.b32.xlu1 %v724_v45, %s1547_s21 }
 0x348   :  { %v864_v54 = vpop.permute.xlu0 %863  ;;  %v768_v55 = vpop.permute.xlu1 %767 }
 0x34c   :  { %v774_v59 = vpop.permute.xlu0 %773  ;;  %v770_v21 = vpop.permute.xlu1 %769 }
 0x34d   :  { %v778_v34 = vsel %vm99_vm1, %v774_v59, %v768_v55  ;;  %v777_v60 = vsel %vm99_vm1, %v768_v55, %v770_v21 }
 0x34e   :  { %v801_v61 = vmul.f32 %v784_v56, %v778_v34  ;;  %v802_v62 = vmul.f32 %v788_v31, %v777_v60  ;;  %v750_v31 = vrot.slane %v1922_v10, %v1649_v14  ;;  %v968_v34 = vrot.slane %v1960_v48, %v1627_v7 }
 0x350   :  { %v809_v63 = vrot.slane %v801_v61, 4  ;;  %v810_v39 = vrot.slane %v802_v62, 4  ;;  %v726_v0 = vpop.permute.xlu0 %725  ;;  %v866_v3 = vpop.permute.xlu1 %865  ;;  %v1974_v61 = vld [vmem:[#allocation3 + $0x7] ss:$8 sm:$0xf] }
 0x351   :  { %v873_v5 = vsel %vm199_vm0, %v864_v54, %v866_v3 }
 0x352   :  { %817 = vst [vmem:[#allocation2] sm:$0xf0] %v809_v63  ;;  %818 = vst [vmem:[#allocation2 + $0x8] sm:$0xf0] %v810_v39  ;;  %v898_v8 = vmul.f32 %v884_v49, %v873_v5 }
 0x354   :  { %v906_v44 = vrot.slane %v898_v8, 4  ;;  %v822_v57 = vpop.permute.xlu0 %821  ;;  %v870_v11 = vpop.permute.xlu1 %869 }
 0x355   :  { %v874_v2 = vsel %vm199_vm0, %v870_v11, %v864_v54 }
 0x356   :  { %914 = vst [vmem:[#allocation2 + $0x28] sm:$0xf0] %v906_v44  ;;  %v897_v12 = vmul.f32 %v880_v9, %v874_v2 }
 0x358   :  { %v905_v18 = vrot.slane %v897_v12, 4  ;;  %v732_v19 = vpop.permute.xlu0 %731  ;;  %v728_v20 = vpop.permute.xlu1 %727 }
 0x359   :  { %v736_v22 = vsel %vm56_vm2, %v732_v19, %v726_v0  ;;  %v735_v23 = vsel %vm56_vm2, %v726_v0, %v728_v20 }
 0x35a   :  { %913 = vst [vmem:[#allocation2 + $0x20] sm:$0xf0] %v905_v18  ;;  %v759_v26 = vmul.f32 %v742_v52, %v736_v22  ;;  %v760_v25 = vmul.f32 %v746_v13, %v735_v23  ;;  %v1064_v13 = vrot.slane %v1974_v61, %v1627_v7 }
 0x35c   :  { %763 = vst [vmem:[#allocation2] sm:$0xf] %v759_v26  ;;  %764 = vst [vmem:[#allocation2 + $0x8] sm:$0xf] %v760_v25  ;;  %v1940_v29 = vpop.permute.xlu0 %827  ;;  %v1942_v30 = vpop.permute.xlu1 %823 }
 0x35d   :  { %v832_v32 = vsel %vm155_vm3, %v1940_v29, %v822_v57  ;;  %v831_v33 = vsel %vm155_vm3, %v822_v57, %v1942_v30 }
 0x35e   :  { %v855_v35 = vmul.f32 %v838_v27, %v832_v32  ;;  %v856_v36 = vmul.f32 %v842_v28, %v831_v33  ;;  %v846_v27 = vrot.slane %v1930_v16, %v1649_v14  ;;  %v850_v28 = vrot.slane %v1930_v16, %v1651_v15 }
 0x35f   :  { %v976_v16 = vrot.slane %v1960_v48, %v1651_v15 }
 0x360   :  { %859 = vst [vmem:[#allocation2 + $0x20] sm:$0xf] %v855_v35  ;;  %860 = vst [vmem:[#allocation2 + $0x28] sm:$0xf] %v856_v36  ;;  %v950_v40 = vpop.permute.xlu0 %949  ;;  %v772_v41 = vpop.permute.xlu1 %771 }
 0x361   :  { %v775_v42 = vsel %vm99_vm1, %v772_v41, %v774_v59  ;;  %v776_v17 = vsel %vm99_vm1, %v770_v21, %v772_v41  ;;  %v754_v21 = vrot.slane %v1922_v10, %v1651_v15 }
 0x362   :  { %v803_v43 = vmul.f32 %v792_v37, %v776_v17  ;;  %v804_v45 = vmul.f32 %v796_v38, %v775_v42  ;;  %v1060_v17 = vrot.slane %v1974_v61, %v1625_v6 }
 0x363   :  { %v1142_v60 = vld [vmem:[#allocation2 + $0x8] sm:$0xff]  ;;  %v1141_v49 = vld [vmem:[#allocation2] sm:$0xff] }
 0x364   :  { %v811_v50 = vrot.slane %v803_v43, 4  ;;  %v812_v51 = vrot.slane %v804_v45, 4  ;;  %v1962_v53 = vpop.permute.xlu0 %1045  ;;  %v868_v54 = vpop.permute.xlu1 %867  ;;  %v1013_v43 = vld [vmem:[#allocation3 + $0x6] ss:$8 sm:$0xf] }
 0x365   :  { %v871_v55 = vsel %vm199_vm0, %v868_v54, %v870_v11  ;;  %v872_v56 = vsel %vm199_vm0, %v866_v3, %v868_v54  ;;  %v964_v11 = vrot.slane %v1960_v48, %v1625_v6 }
 0x366   :  { %819 = vst [vmem:[#allocation2 + $0x10] sm:$0xf0] %v811_v50  ;;  %820 = vst [vmem:[#allocation2 + $0x18] sm:$0xf0] %v812_v51  ;;  %v899_v59 = vmul.f32 %v888_v46, %v872_v56  ;;  %v900_v58 = vmul.f32 %v892_v47, %v871_v55  ;;  %v1072_v50 = vrot.slane %v1974_v61, %v1651_v15 }
 0x367   :  { %v1146_v62 = vld [vmem:[#allocation2 + $0x28] sm:$0xff]  ;;  %v1145_v63 = vld [vmem:[#allocation2 + $0x20] sm:$0xff]  ;;  %v1022_v56 = vrot.slane %v1013_v43, %v1627_v7 }
 0x368   :  { %v907_v39 = vrot.slane %v899_v59, 4  ;;  %v908_v0 = vrot.slane %v900_v58, 4  ;;  %v730_v3 = vpop.permute.xlu0 %729  ;;  %v952_v5 = vpop.permute.xlu1 %951  ;;  %v1449_v8 = vpack.c.bf16 %v1146_v62, %v1142_v60  ;;  %v1451_v9 = vpack.c.bf16 %v1145_v63, %v1141_v49 }
 0x369   :  { %v733_v44 = vsel %vm56_vm2, %v730_v3, %v732_v19  ;;  %v734_v10 = vsel %vm56_vm2, %v728_v20, %v730_v3  ;;  %v956_v57 = vsel %vm290_vm4, %v950_v40, %v952_v5  ;;  %v1109_v3 = vld [vmem:[#allocation3 + $0x20] ss:$8 sm:$0xf] }
 0x36a   :  { %915 = vst [vmem:[#allocation2 + $0x30] sm:$0xf0] %v907_v39  ;;  %916 = vst [vmem:[#allocation2 + $0x38] sm:$0xf0] %v908_v0  ;;  %v761_v2 = vmul.f32 %v750_v31, %v734_v10  ;;  %v762_v12 = vmul.f32 %v754_v21, %v733_v44  ;;  %v982_v52 = vmul.f32 %v968_v34, %v956_v57  ;;  %1450 = vmatprep.subr.bf16.mxu0 %v1449_v8 }
 0x36b   :  { %1452 = vmatpush1.bf16.msra.mxu0 %v1451_v9  ;;  %v1018_v39 = vrot.slane %v1013_v43, %v1625_v6 }
 0x36c   :  { %765 = vst [vmem:[#allocation2 + $0x10] sm:$0xf] %v761_v2  ;;  %766 = vst [vmem:[#allocation2 + $0x18] sm:$0xf] %v762_v12  ;;  %v990_v18 = vrot.slane %v982_v52, 4  ;;  %v948_v19 = vpop.permute.xlu0 %947  ;;  %v1048_v20 = vpop.permute.xlu1 %1047 }
 0x36d   :  { %v957_v22 = vsel %vm290_vm4, %v948_v19, %v950_v40  ;;  %v1052_v23 = vsel %vm390_vm5, %v1962_v53, %v1048_v20  ;;  %v972_v40 = vrot.slane %v1960_v48, %v1649_v14 }
 0x36e   :  { %998 = vst [vmem:[#allocation2 + $0x48] sm:$0xf0] %v990_v18  ;;  %v981_v26 = vmul.f32 %v964_v11, %v957_v22  ;;  %v1078_v25 = vmul.f32 %v1064_v13, %v1052_v23  ;;  %v1114_v18 = vrot.slane %v1109_v3, %v1625_v6 }
 0x370   :  { %v989_v32 = vrot.slane %v981_v26, 4  ;;  %v1086_v33 = vrot.slane %v1078_v25, 4  ;;  %v1004_v35 = vpop.permute.xlu0 %1003  ;;  %v826_v36 = vpop.permute.xlu1 %825 }
 0x371   :  { %v829_v37 = vsel %vm155_vm3, %v826_v36, %v1940_v29  ;;  %v830_v38 = vsel %vm155_vm3, %v1942_v30, %v826_v36  ;;  %v1068_v30 = vrot.slane %v1974_v61, %v1649_v14 }
 0x372   :  { %997 = vst [vmem:[#allocation2 + $0x40] sm:$0xf0] %v989_v32  ;;  %1094 = vst [vmem:[#allocation2 + $0x68] sm:$0xf0] %v1086_v33  ;;  %v857_v41 = vmul.f32 %v846_v27, %v830_v38  ;;  %v858_v42 = vmul.f32 %v850_v28, %v829_v37  ;;  %v1118_v33 = vrot.slane %v1109_v3, %v1627_v7 }
 0x373   :  { %v1144_v0 = vld [vmem:[#allocation2 + $0x18] sm:$0xff]  ;;  %v1143_v8 = vld [vmem:[#allocation2 + $0x10] sm:$0xff] }
 0x374   :  { %861 = vst [vmem:[#allocation2 + $0x30] sm:$0xf] %v857_v41  ;;  %862 = vst [vmem:[#allocation2 + $0x38] sm:$0xf] %v858_v42  ;;  %v954_v29 = vpop.permute.xlu0 %953  ;;  %v1044_v45 = vpop.permute.xlu1 %1043  ;;  %v1122_v42 = vrot.slane %v1109_v3, %v1649_v14 }
 0x375   :  { %v955_v46 = vsel %vm290_vm4, %v952_v5, %v954_v29  ;;  %v958_v47 = vsel %vm290_vm4, %v954_v29, %v948_v19  ;;  %v1053_v48 = vsel %vm390_vm5, %v1044_v45, %v1962_v53  ;;  %v1026_v19 = vrot.slane %v1013_v43, %v1649_v14 }
 0x376   :  { %v983_v51 = vmul.f32 %v972_v40, %v955_v46  ;;  %v984_v54 = vmul.f32 %v976_v16, %v958_v47  ;;  %v1077_v55 = vmul.f32 %v1060_v17, %v1053_v48  ;;  %v1126_v16 = vrot.slane %v1109_v3, %v1651_v15 }
 0x378   :  { %v991_v31 = vrot.slane %v983_v51, 4  ;;  %v992_v59 = vrot.slane %v984_v54, 4  ;;  %v1085_v58 = vrot.slane %v1077_v55, 4  ;;  %v1050_v21 = vpop.permute.xlu0 %1049  ;;  %v1006_v34 = vpop.permute.xlu1 %1005 }
 0x379   :  { %v1051_v60 = vsel %vm390_vm5, %v1048_v20, %v1050_v21  ;;  %v1054_v62 = vsel %vm390_vm5, %v1050_v21, %v1044_v45  ;;  %v1010_v53 = vsel %vm346_vm6, %v1004_v35, %v1006_v34  ;;  %v1030_v20 = vrot.slane %v1013_v43, %v1651_v15  ;;  %v1149_v17 = vld [vmem:[#allocation2 + $0x40] sm:$0xff] }
 0x37a   :  { %999 = vst [vmem:[#allocation2 + $0x50] sm:$0xf0] %v991_v31  ;;  %1000 = vst [vmem:[#allocation2 + $0x58] sm:$0xf0] %v992_v59  ;;  %v1079_v61 = vmul.f32 %v1068_v30, %v1051_v60  ;;  %v1080_v49 = vmul.f32 %v1072_v50, %v1054_v62  ;;  %v1036_v63 = vmul.f32 %v1022_v56, %v1010_v53  ;;  %v1423_v56 = vld [vmem:[%s2090_s1 + $0x4] sm:$0xf] }
 0x37b   :  { %1093 = vst [vmem:[#allocation2 + $0x60] sm:$0xf0] %v1085_v58  ;;  %v1148_v5 = vld [vmem:[#allocation2 + $0x38] sm:$0xff]  ;;  %v1147_v9 = vld [vmem:[#allocation2 + $0x30] sm:$0xff] }
 0x37c   :  { %v1087_v44 = vrot.slane %v1079_v61, 4  ;;  %v1088_v10 = vrot.slane %v1080_v49, 4  ;;  %1040 = vst [vmem:[#allocation2 + $0x68] sm:$0xf] %v1036_v63  ;;  %v1100_v57 = vpop.permute.xlu0 %1099  ;;  %v1002_v11 = vpop.permute.xlu1 %1001  ;;  %v1457_v2 = vpack.c.bf16 %v1148_v5, %v1144_v0  ;;  %v1459_v12 = vpack.c.bf16 %v1147_v9, %v1143_v8 }
 0x37d   :  { %v1011_v52 = vsel %vm346_vm6, %v1002_v11, %v1004_v35  ;;  %v1150_v35 = vld [vmem:[#allocation2 + $0x48] sm:$0xff] }
 0x37e   :  { %1095 = vst [vmem:[#allocation2 + $0x70] sm:$0xf0] %v1087_v44  ;;  %1096 = vst [vmem:[#allocation2 + $0x78] sm:$0xf0] %v1088_v10  ;;  %v1035_v13 = vmul.f32 %v1018_v39, %v1011_v52  ;;  %1458 = vmatprep.subr.bf16.mxu1 %v1457_v2 }
 0x37f   :  { %1460 = vmatpush1.bf16.msra.mxu1 %v1459_v12 }
 0x380   :  { %1039 = vst [vmem:[#allocation2 + $0x60] sm:$0xf] %v1035_v13  ;;  %v1098_v22 = vpop.permute.xlu0 %1097  ;;  %v1008_v23 = vpop.permute.xlu1 %1007 }
 0x381   :  { %v1107_v26 = vsel %vm446_vm7, %v1098_v22, %v1100_v57  ;;  %v1009_v25 = vsel %vm346_vm6, %v1006_v34, %v1008_v23  ;;  %v1012_v27 = vsel %vm346_vm6, %v1008_v23, %v1002_v11  ;;  %v1152_v48 = vld [vmem:[#allocation2 + $0x58] sm:$0xff]  ;;  %v1151_v51 = vld [vmem:[#allocation2 + $0x50] sm:$0xff]  ;;  %v1432_v23 = vld [vmem:[%s2093_s4 + $0x4] sm:$0xf] }
 0x382   :  { %v1131_v28 = vmul.f32 %v1114_v18, %v1107_v26  ;;  %v1037_v32 = vmul.f32 %v1026_v19, %v1009_v25  ;;  %v1038_v6 = vmul.f32 %v1030_v20, %v1012_v27 }
 0x383   :  { %v1154_v36 = vld [vmem:[#allocation2 + $0x68] sm:$0xff] }
 0x384   :  { %1135 = vst [vmem:[#allocation2 + $0x80] sm:$0xf] %v1131_v28  ;;  %1041 = vst [vmem:[#allocation2 + $0x70] sm:$0xf] %v1037_v32  ;;  %v1102_v37 = vpop.permute.xlu1 %1101  ;;  %v1453_v38 = vpack.c.bf16 %v1154_v36, %v1150_v35  ;;  %v1431_v35 = vld [vmem:[%s2092_s3 + $0x4] sm:$0xf] }
 0x385   :  { %1042 = vst [vmem:[#allocation2 + $0x78] sm:$0xf] %v1038_v6  ;;  %v1106_v40 = vsel %vm446_vm7, %v1100_v57, %v1102_v37 }
 0x386   :  { %v1132_v41 = vmul.f32 %v1118_v33, %v1106_v40  ;;  %1454 = vmatprep.subr.bf16.mxu0 %v1453_v38 }
 0x387   :  { %v1153_v43 = vld [vmem:[#allocation2 + $0x60] sm:$0xff] }
 0x388   :  { %1136 = vst [vmem:[#allocation2 + $0x88] sm:$0xf] %v1132_v41  ;;  %v1104_v7 = vpop.permute.xlu1 %1103  ;;  %v1455_v29 = vpack.c.bf16 %v1153_v43, %v1149_v17 }
 0x389   :  { %v1105_v45 = vsel %vm446_vm7, %v1102_v37, %v1104_v7  ;;  %v1108_v30 = vsel %vm446_vm7, %v1104_v7, %v1098_v22 }
 0x38a   :  { %v1133_v46 = vmul.f32 %v1122_v42, %v1105_v45  ;;  %v1134_v47 = vmul.f32 %v1126_v16, %v1108_v30  ;;  %1456 = vmatpush1.bf16.msra.mxu0 %v1455_v29 }
 0x38b   :  { %v1155_v14 = vld [vmem:[#allocation2 + $0x70] sm:$0xff]  ;;  %v1157_v24 = vld [vmem:[#allocation2 + $0x80] sm:$0xf] }
 0x38c   :  { %v1156_v50 = vld [vmem:[#allocation2 + $0x78] sm:$0xff]  ;;  %1137 = vst [vmem:[#allocation2 + $0x90] sm:$0xf] %v1133_v46  ;;  %1138 = vst [vmem:[#allocation2 + $0x98] sm:$0xf] %v1134_v47  ;;  %v1463_v54 = vpack.c.bf16 %v1155_v14, %v1151_v51 }
 0x38d   :  { %v1461_v15 = vpack.c.bf16 %v1156_v50, %v1152_v48 }
 0x38f   :  { %1462 = vmatprep.subr.bf16.mxu1 %v1461_v15  ;;  %v1158_v55 = vld [vmem:[#allocation2 + $0x88] sm:$0xf] }
 0x390   :  { %1464 = vmatpush1.bf16.msra.mxu1 %v1463_v54  ;;  %1425 = vmatprep.subr.msk.mxu0 %vm513_vm8, %v1158_v55  ;;  %v1487_v54 = vld [vmem:[%s2089_s0] sm:$0xff] }
 0x391   :  { %1426 = vmatpush1.msk.msra.mxu0 %vm513_vm8, %v1157_v24  ;;  %v1166_v58 = vpop.permute.xlu0 %1165  ;;  %v1488_v24 = vld [vmem:[%s2089_s0 + $0x8] sm:$0xff] }
 0x392   :  { %1427 = vmatmul.mubr.msk.f32.vlgmr.msra.gmra.mrb[2].mxu0 %vm509_vm9, %v1423_v56 }
 0x393   :  { %v1160_v31 = vld [vmem:[#allocation2 + $0x98] sm:$0xf]  ;;  %v1159_v59 = vld [vmem:[#allocation2 + $0x90] sm:$0xf] }
 0x394   :  { %1428 = vmatprep.subr.msk.mxu1 %vm513_vm8, %v1160_v31 }
 0x395   :  { %1429 = vmatpush1.msk.msra.mxu1 %vm513_vm8, %v1159_v59 }
 0x396   :  { %1430 = vmatmul.mubr.msk.f32.vlgmr.msra.gmra.mrb[2].mxu1 %vm509_vm9, %v1423_v56 }
 0x465   :  { %v1249_v21 = vpop.f32.mrb[2].mxu0 }
 0x466   :  { %v1250_v34 = vadd.f32 %v1249_v21, %v1166_v58  ;;  %v1251_v60 = vpop.f32.mrb[3].mxu0 }
 0x467   :  { %v1252_v62 = vadd.f32 %v1251_v60, %v1166_v58 }
 0x468   :  { %v1325_v53 = vsel %vm513_vm8, %v1250_v34, 0.0  ;;  %v1334_v61 = vmul.f32 %v1250_v34, %v1250_v34 }
 0x469   :  { %v1326_v49 = vsel %vm513_vm8, %v1252_v62, 0.0  ;;  %v1335_v63 = vmul.f32 %v1252_v62, %v1252_v62  ;;  %v1320_v39 = vpop.f32.mrb[2].mxu1 }
 0x46a   :  { %v1321_v0 = vadd.f32 %v1320_v39, %v1166_v58  ;;  %v1322_v3 = vpop.f32.mrb[3].mxu1  ;;  %v1327_v5 = vadd.f32 %v1326_v49, %v1325_v53  ;;  %v1338_v8 = vsel %vm513_vm8, %v1334_v61, 0.0 }
 0x46b   :  { %v1323_v9 = vadd.f32 %v1322_v3, %v1166_v58  ;;  %v1339_v44 = vsel %vm513_vm8, %v1335_v63, 0.0 }
 0x46c   :  { %v1336_v10 = vmul.f32 %v1321_v0, %v1321_v0  ;;  %v1328_v57 = vsel %vm513_vm8, %v1321_v0, 0.0  ;;  %v1340_v11 = vadd.f32 %v1339_v44, %v1338_v8 }
 0x46d   :  { %v1329_v2 = vadd.f32 %v1328_v57, %v1327_v5  ;;  %v1330_v12 = vsel %vm513_vm8, %v1323_v9, 0.0  ;;  %v1337_v52 = vmul.f32 %v1323_v9, %v1323_v9 }
 0x46e   :  { %v1341_v13 = vsel %vm513_vm8, %v1336_v10, 0.0 }
 0x46f   :  { %v1331_v18 = vadd.f32 %v1330_v12, %v1329_v2  ;;  %v1342_v19 = vadd.f32 %v1341_v13, %v1340_v11  ;;  %v1343_v20 = vsel %vm513_vm8, %v1337_v52, 0.0 }
 0x471   :  { %1332 = vadd.xlane.f32.xlu1 %v1331_v18  ;;  %v1344_v22 = vadd.f32 %v1343_v20, %v1342_v19 }
 0x473   :  { %1345 = vadd.xlane.f32.xlu0 %v1344_v22 }
 0x482   :  { %1373 = vperm.xlu1 %1480, %v1432_v23  }
 0x4fe   :  { %v1333_v26 = vpop.xlane.xlu1 %1332 }
 0x4ff   :  { %v1347_v25 = vmul.f32 0.001953125, %v1333_v26 }
 0x500   :  { %v1346_v27 = vpop.xlane.xlu0 %1345 }
 0x501   :  { %v1348_v28 = vmul.f32 0.001953125, %v1346_v27  ;;  %v1349_v32 = vmul.f32 %v1347_v25, %v1347_v25  ;;  %v1351_v38 = vsub.f32 %v1250_v34, %v1347_v25  ;;  %v1352_v40 = vsub.f32 %v1252_v62, %v1347_v25 }
 0x502   :  { %v1353_v41 = vsub.f32 %v1321_v0, %v1347_v25  ;;  %v1354_v42 = vsub.f32 %v1323_v9, %v1347_v25  ;;  %v1374_v45 = vpop.permute.xlu1 %1373 }
 0x503   :  { %v1350_v6 = vsub.f32 %v1348_v28, %v1349_v32 }
 0x505   :  { %v1355_v33 = vadd.f32 1e-05, %v1350_v6 }
 0x507   :  { %1485 = vrsqrt.f32 %v1355_v33 }
 0x511   :  { %v1486_v36 = vpop.eup %1485 }
 0x512   :  { %v1359_v37 = vmul.f32 %v1486_v36, %v1431_v35 }
 0x514   :  { %1362 = vperm.xlu0 %1479, %v1359_v37  }
 0x593   :  { %v1363_v16 = vpop.permute.xlu0 %1362 }
 0x594   :  { %v1365_v17 = vmul.f32 %v1363_v16, %v1351_v38  ;;  %v1366_v43 = vmul.f32 %v1363_v16, %v1352_v40  ;;  %v1367_v7 = vmul.f32 %v1363_v16, %v1353_v41  ;;  %v1368_v29 = vmul.f32 %v1363_v16, %v1354_v42 }
 0x596   :  { %v1376_v30 = vadd.f32 %v1374_v45, %v1365_v17  ;;  %v1377_v46 = vadd.f32 %v1374_v45, %v1366_v43  ;;  %v1378_v47 = vadd.f32 %v1374_v45, %v1367_v7  ;;  %v1379_v48 = vadd.f32 %v1374_v45, %v1368_v29 }
 0x598   :  { %v1380_v50 = vmax.f32 %v1376_v30, 0.0  ;;  %v1381_v51 = vmax.f32 %v1377_v46, 0.0  ;;  %v1382_v14 = vmax.f32 %v1378_v47, 0.0  ;;  %v1383_v15 = vmax.f32 %v1379_v48, 0.0 }
 0x59a   :  { %v1384_v55 = vadd.f32 %v1487_v54, %v1380_v50  ;;  %v1385_v56 = vadd.f32 %v1381_v51, %v1609_v1  ;;  %v1386_v31 = vadd.f32 %v1488_v24, %v1382_v14  ;;  %v1387_v59 = vadd.f32 %v1383_v15, %v1618_v4 }
 0x59c   :  { %v1388_v58 = vmax.f32 %v1384_v55, 0.0  ;;  %v1389_v21 = vmax.f32 %v1385_v56, 0.0  ;;  %v1390_v34 = vmax.f32 %v1386_v31, 0.0  ;;  %v1391_v60 = vmax.f32 %v1387_v59, 0.0 }
 0x59e   :  { %v1396_v62 = vcombine.low %v1388_v58, %v1389_v21  ;;  %v1397_v53 = vcombine.low %v1390_v34, %v1391_v60 }
 0x5a0   :  { %1400 = vst [vmem:[#allocation6] sm:$0xff] %v1396_v62  ;;  %1401 = vst [vmem:[#allocation6 + $0x8] sm:$0xff] %v1397_v53 }
 0x5a1   :  { %1522 = shalt.err (!%p1519_p12)
}
 0x5a2   :  { %s1523_s17 = scalar_lea.hbm %s2095_s6, 256 }
 0x5a3   :  { %p1524_p13 = scmp.ne.s32.totalorder %s2095_s6, %s1523_s17  ;;  %p1527_p0 = scmp.lt.u32.totalorder %s1523_s17, %s2095_s6 }
 0x5a5   :  { %p1529_p1 = pnand %p1527_p0, %p1524_p13 }
 0x5a7   :  { %1532 = shalt.err (!%p1529_p1)
}
 0x5a8   :  { %1411 = dma.vmem_to_hbm [thread:$0]  %s1409_s5, 256, %s2095_s6, [#allocation5]  }
 0x5a9   :  { %1535 = dma.done.wait [#allocation5], 256  }
 0x5aa   :  { %1536 = vsyncadd [#allocation5], 4294967040 }
 0x5ab   :  { %1415 = vsyncpa [#allocation4], 1 }
 0x5ac   :  { %1416 = vsyncpa [#allocation5], 1 }

</bundles_post_ra>
